<compile_context>
chip_gen: v7x
topology: tpu7x:2x2x1
jax: 0.10.0
libtpu: 0.0.40
codegen_flags: <defaults>
</compile_context>

<pallas_src>
import math

import jax
import jax.numpy as jnp
from jax.experimental import pallas as pl
from jax.experimental.pallas import tpu as pltpu


# ------------------------------ in-kernel helpers ------------------------------

def _mm(a, b):
    # (M, K) x (K, N) -> (M, N), f32 accumulation on the MXU.
    return jax.lax.dot_general(a, b, (((1,), (0,)), ((), ())),
                               preferred_element_type=jnp.float32)


def _mm_t(a, b):
    # (M, K) x (N, K) -> (M, N), contracting trailing dims (standard attention q.k^T form).
    return jax.lax.dot_general(a, b, (((1,), (1,)), ((), ())),
                               preferred_element_type=jnp.float32)


def _layer_norm(x, g, b):
    mu = jnp.mean(x, axis=-1, keepdims=True)
    var = jnp.mean((x - mu) * (x - mu), axis=-1, keepdims=True)
    return (x - mu) * jax.lax.rsqrt(var + 1e-5) * g + b


# ------------------------------ fused DALLE kernel ------------------------------

def _dalle_fused_kernel(
        cond_ids_ref, patches_ref, attn_bias_ref,
        w_enc_ref, b_enc_ref, cb_ref, cb_t_ref, cb_sq_ref,
        emb_table_ref, pos_all_ref,
        ln1_g_ref, ln1_b_ref,
        wq_ref, bq_ref, wk_ref, bk_ref, wv_ref, bv_ref, wo_ref, bo_ref,
        ln2_g_ref, ln2_b_ref, w1_ref, b1_ref, w2_ref, b2_ref,
        w_out_ref, b_out_ref,
        logits_ref, loss_ref):
    f32, bf16 = jnp.float32, jnp.bfloat16

    n_q, V, _D = cb_ref.shape
    BT = patches_ref.shape[0]            # B*T latent frames, batch folded into M
    Nq, Nk = attn_bias_ref.shape         # Nq = B*Tq content rows, Nk = B*(Tc_pad+Tq) key rows
    Nc = Nk - Nq                         # B*Tc_pad condition rows
    H = wq_ref.shape[0]
    VOC = emb_table_ref.shape[0]         # merged vocab = 128 (cond slot, padded) + V (content slot)
    OFF = VOC - V                        # content-code offset in merged vocab (lane-aligned: 128)

    # ---------- content codec: conv1d encoder (im2col matmul) + residual VQ, batch folded ----------
    z = _mm(patches_ref[...].astype(bf16), w_enc_ref[...]) + b_enc_ref[...]      # (B*T, D) f32

    lane_iota = jax.lax.broadcasted_iota(jnp.int32, (BT, V), 1)
    residual = z
    codes = []
    for qi in range(n_q):                                   # n_q is tiny -> fully unrolled
        # argmin_v ||r - c_v||^2 == argmin_v (||c_v||^2 - 2 r.c_v); codebook pre-transposed host-side
        score = cb_sq_ref[qi] - 2.0 * _mm(residual.astype(bf16), cb_t_ref[qi])   # (B*T, V) f32
        smin = jnp.min(score, axis=-1, keepdims=True)
        code = jnp.min(jnp.where(score <= smin, lane_iota, V),
                       axis=-1, keepdims=True)              # (B*T, 1) first argmin (tie-break low)
        sel = (lane_iota == code).astype(bf16)              # (B*T, V) one-hot of winning code
        residual = residual - _mm(sel, cb_ref[qi])          # codebook-row "gather" via matmul
        codes.append(code)

    # ---------- merged [condition ; content] one-hot and a single embedding matmul ----------
    cond_iota = jax.lax.broadcasted_iota(jnp.int32, (Nc, VOC), 1)
    code_iota = jax.lax.broadcasted_iota(jnp.int32, (BT, VOC), 1)
    pieces = [(cond_ids_ref[...] == cond_iota).astype(f32)]             # pad id (-1) -> all-zero row
    for cd in codes:
        pieces.append(((cd + OFF) == code_iota).astype(f32))            # content codes at lane OFF..
    all_oh = jnp.concatenate(pieces, axis=0)                            # (Nk, VOC) {0,1}
    emb_all = _mm(all_oh.astype(bf16), emb_table_ref[...]) + pos_all_ref[...]     # (Nk, H) f32

    c = emb_all[:Nc, :]                  # condition rows
    x = emb_all[Nc:, :]                  # content rows (residual stream)
    x_oh = all_oh[Nc:, OFF:]             # (Nq, V) content one-hots -> CE targets (aligned slice)

    # ---------- attention: content queries over folded [cond ; content] keys; per-batch block-
    #            diagonal mask + cond-padding mask come in via the precomputed additive bias ----------
    xn = _layer_norm(x, ln1_g_ref[...], ln1_b_ref[...])
    xn_b = xn.astype(bf16)
    seq_b = jnp.concatenate([c.astype(bf16), xn_b], axis=0)             # (Nk, H) bf16, cast once
    q = (_mm(xn_b, wq_ref[...]) + bq_ref[...]).astype(bf16)             # (Nq, H)  three separate
    k = (_mm(seq_b, wk_ref[...]) + bk_ref[...]).astype(bf16)            # (Nk, H)  H-wide matmuls ->
    v = (_mm(seq_b, wv_ref[...]) + bv_ref[...]).astype(bf16)            # (Nk, H)  no lane-64 slicing

    s = _mm_t(q, k) * (1.0 / math.sqrt(H)) + attn_bias_ref[...]         # (Nq, Nk) f32, Nk lane-dense
    m = jnp.max(s, axis=-1, keepdims=True)
    p = jnp.exp(s - m)
    p = p * pl.reciprocal(jnp.sum(p, axis=-1, keepdims=True), approx=True)   # EUP reciprocal
    attn = _mm(p.astype(bf16), v)                                        # (Nq, H)
    h = x + _mm(attn.astype(bf16), wo_ref[...]) + bo_ref[...]            # residual add fused

    # ---------- MLP block ----------
    hn = _layer_norm(h, ln2_g_ref[...], ln2_b_ref[...])
    m1 = jax.nn.gelu(_mm(hn.astype(bf16), w1_ref[...]) + b1_ref[...], approximate=True)
    h = h + _mm(m1.astype(bf16), w2_ref[...]) + b2_ref[...]

    # ---------- logits (bf16 store) + cross-entropy (f32 in-register; never round-trips HBM) ----------
    logits = _mm(h.astype(bf16), w_out_ref[...]) + b_out_ref[...]        # (Nq, V) f32
    logits_ref[...] = logits.astype(logits_ref.dtype)

    mx = jnp.max(logits, axis=-1, keepdims=True)
    lse = mx + jnp.log(jnp.sum(jnp.exp(logits - mx), axis=-1, keepdims=True))
    tgt = jnp.sum(logits * x_oh, axis=-1, keepdims=True)                 # target logit via one-hot
    loss_sum = jnp.sum(lse - tgt, axis=0, keepdims=True)                 # (1, 1) total CE sum
    loss_ref[...] = jnp.broadcast_to(loss_sum, loss_ref.shape)           # lane-dense (8, 128) slab


# ------------------------------------- DALLE model -------------------------------------

class DALLEPallas:
    """Synthetic, deterministic re-implementation of DALLE.forward, fused into one Pallas kernel."""

    def __init__(self, key, *, n_q=2, conv_kernel=16, conv_stride=8, latent_dim=32,
                 codebook_size=128, cond_vocab=64, hidden=64, mlp_hidden=128,
                 content_len=32, cond_len=8, cond_len_pad=32):
        self.content_info = {'key': 'audio'}
        self.condition_info = {'key': 'text'}
        self.n_q = n_q
        self.K = conv_kernel
        self.S = conv_stride
        self.D = latent_dim
        self.V = codebook_size
        self.cond_vocab = cond_vocab
        self.H = hidden
        self.Tq = content_len          # n_q * T content tokens per batch element
        self.Tc = cond_len
        # Condition padded so per-batch Tk = Tc_pad + Tq is a multiple of 16 (bf16 sublane packing);
        # with the B=2 example this makes the folded key count Nk = B*(Tc_pad+Tq) = 128 lanes exactly.
        self.Tc_pad = cond_len_pad
        self.Vc_pad = 128              # condition slot width in the merged embedding table
        assert cond_vocab <= self.Vc_pad

        def nrm(k, shape, scale=0.02):
            return (scale * jax.random.normal(k, shape)).astype(jnp.float32)

        bf16 = jnp.bfloat16
        keys = jax.random.split(key, 20)

        # --- content codec (EnCodec-like): conv1d encoder + residual VQ codebooks ---
        self.w_enc = nrm(keys[0], (self.K, self.D), 0.1).astype(bf16)
        self.b_enc = jnp.zeros((1, self.D), jnp.float32)
        self.codebooks = nrm(keys[1], (n_q, self.V, self.D), 0.5).astype(bf16)      # (n_q, V, D)
        self.codebooks_t = jnp.transpose(self.codebooks, (0, 2, 1))                 # (n_q, D, V) pre-T
        # precomputed ||c||^2 rows, (n_q, 1, V) f32 -- lane-dense, no in-kernel transpose
        self.cb_sq = jnp.sum(self.codebooks.astype(jnp.float32) ** 2, axis=-1)[:, None, :]

        # --- diffusion transformer ---
        cond_emb = nrm(keys[3], (self.cond_vocab, self.H))
        content_emb = nrm(keys[2], (self.V, self.H))
        # merged embedding table: [cond slot (padded to 128 rows) ; content slot] -> one lookup matmul
        self.emb_table = jnp.concatenate(
            [cond_emb, jnp.zeros((self.Vc_pad - self.cond_vocab, self.H), jnp.float32), content_emb],
            axis=0).astype(bf16)                                                     # (256, H)
        self.pos_content = nrm(keys[4], (self.Tq, self.H))
        self.pos_cond = nrm(keys[5], (self.Tc, self.H))
        self.wq = nrm(keys[6], (self.H, self.H)).astype(bf16)    # separate Q/K/V projections so the
        self.wk = nrm(keys[7], (self.H, self.H)).astype(bf16)    # kernel never slices a (·,3H) tensor
        self.wv = nrm(keys[8], (self.H, self.H)).astype(bf16)    # at a non-128-lane boundary
        self.bq = jnp.zeros((1, self.H), jnp.float32)
        self.bk = jnp.zeros((1, self.H), jnp.float32)
        self.bv = jnp.zeros((1, self.H), jnp.float32)
        self.wo = nrm(keys[9], (self.H, self.H)).astype(bf16)
        self.bo = jnp.zeros((1, self.H), jnp.float32)
        self.ln1_g = jnp.ones((1, self.H), jnp.float32)
        self.ln1_b = jnp.zeros((1, self.H), jnp.float32)
        self.ln2_g = jnp.ones((1, self.H), jnp.float32)
        self.ln2_b = jnp.zeros((1, self.H), jnp.float32)
        self.w1 = nrm(keys[10], (self.H, mlp_hidden)).astype(bf16)
        self.b1 = jnp.zeros((1, mlp_hidden), jnp.float32)
        self.w2 = nrm(keys[11], (mlp_hidden, self.H)).astype(bf16)
        self.b2 = jnp.zeros((1, self.H), jnp.float32)
        self.w_out = nrm(keys[12], (self.H, self.V)).astype(bf16)
        self.b_out = jnp.zeros((1, self.V), jnp.float32)

    # -------------------------- prepare_input glue (indexing / padding only) --------------------------
    def prepare_input(self, batch):
        """Glue only: im2col patches for the conv encoder (batch folded into M) and padded, folded
        int32 condition ids.  Tokenization itself (conv + residual VQ) runs inside the fused kernel."""
        wav = batch[self.content_info['key']]                        # (B, 1, L), NCL like PyTorch
        cond = batch[self.condition_info['key']].astype(jnp.int32)   # (B, Tc)
        B, _, L = wav.shape
        T = (L - self.K) // self.S + 1
        assert self.n_q * T == self.Tq, "audio length inconsistent with content_len"
        assert cond.shape[1] == self.Tc
        idx = jnp.arange(T)[:, None] * self.S + jnp.arange(self.K)[None, :]
        patches = wav[:, 0, :][:, idx].reshape(B * T, self.K)        # (B*T, K) im2col, batch folded
        cond_pad = jnp.pad(cond, ((0, 0), (0, self.Tc_pad - self.Tc)), constant_values=-1)
        cond_ids = cond_pad.reshape(B * self.Tc_pad, 1)              # pad id -1 -> all-zero one-hot
        return cond_ids, patches, B, T

    # ------------------------------------ forward ------------------------------------
    def forward(self, batch):
        cond_ids, patches, B, T = self.prepare_input(batch)
        H, V, n_q = self.H, self.V, self.n_q
        Tc, Tc_pad, Tq = self.Tc, self.Tc_pad, self.Tq
        Nc, Nq = B * Tc_pad, B * Tq
        Nk = Nc + Nq

        # Positional rows for the folded [cond ; content] sequence (content rows in (q, b, t) order).
        pos_cond_pad = jnp.concatenate(
            [self.pos_cond, jnp.zeros((Tc_pad - Tc, H), jnp.float32)], axis=0)
        pos_cond_f = jnp.tile(pos_cond_pad, (B, 1))                                    # (Nc, H)
        pos_content_f = jnp.broadcast_to(
            self.pos_content.reshape(n_q, 1, T, H), (n_q, B, T, H)).reshape(Nq, H)     # (Nq, H)
        pos_all = jnp.concatenate([pos_cond_f, pos_content_f], axis=0)                 # (Nk, H)

        # Block-diagonal per-batch attention mask (+ cond-padding mask) as one additive bias.
        # Pure index metadata, built once host-side; keeps the kernel free of int div/mod.
        q_b = (jnp.arange(Nq) // T) % B                       # batch id of each content (query) row
        kc_b = jnp.arange(Nc) // Tc_pad                       # batch id of each condition key row
        kc_valid = (jnp.arange(Nc) % Tc_pad) < Tc             # real (non-padded) condition positions
        k_b = jnp.concatenate([kc_b, q_b])
        k_valid = jnp.concatenate([kc_valid, jnp.ones((Nq,), bool)])
        mask = (q_b[:, None] == k_b[None, :]) & k_valid[None, :]
        attn_bias = jnp.where(mask, 0.0, -1e9).astype(jnp.float32)                     # (Nq, Nk)

        weights = (self.w_enc, self.b_enc, self.codebooks, self.codebooks_t, self.cb_sq,
                   self.emb_table, pos_all,
                   self.ln1_g, self.ln1_b,
                   self.wq, self.bq, self.wk, self.bk, self.wv, self.bv, self.wo, self.bo,
                   self.ln2_g, self.ln2_b, self.w1, self.b1, self.w2, self.b2,
                   self.w_out, self.b_out)
        inputs = (cond_ids, patches, attn_bias) + weights

        # Grid-less single invocation: batch is folded into the matmul M dimension, every operand is
        # resident exactly once in VMEM (no pipeline double-buffering of the constant weights).
        vmem = pltpu.MemorySpace.VMEM
        logits_flat, loss_slab = pl.pallas_call(
            _dalle_fused_kernel,
            in_specs=[pl.BlockSpec(memory_space=vmem) for _ in inputs],
            out_specs=(pl.BlockSpec(memory_space=vmem),
                       pl.BlockSpec(memory_space=vmem)),
            out_shape=(jax.ShapeDtypeStruct((Nq, V), jnp.bfloat16),     # bf16 logits store
                       jax.ShapeDtypeStruct((8, 128), jnp.float32)),    # lane-dense loss slab
        )(*inputs)

        # Folded (q, b, t) row order -> (B, Tq = n_q*T, V), matching codes.reshape(B, n_q*T).
        logits = logits_flat.reshape(n_q, B, T, V).transpose(1, 0, 2, 3).reshape(B, Tq, V)
        loss = loss_slab[0, 0] / (B * Tq)                     # mean CE over all content tokens
        return {'loss': loss, 'logits': logits}

    # TODO(synk): generate_content / sample / decode_to_wav paths (sampling loops, top-k/top-r
    # truncation, EnCodec decoder) are inference utilities outside forward() and are not
    # implemented here.


# ---------------------------------------- main ----------------------------------------

if __name__ == "__main__":
    key = jax.random.PRNGKey(0)
    k_model, k_wav, k_txt = jax.random.split(key, 3)

    # small shapes: B=2, audio length 136 -> T=16 latent frames, n_q=2 -> 32 content tokens,
    # 8 condition (text) tokens (padded to 32 in-kernel), hidden=64, codebook/logit vocab=128.
    B, L = 2, 136
    Tc = 8
    model = DALLEPallas(k_model, n_q=2, content_len=32, cond_len=Tc, cond_len_pad=32)

    wav = jax.random.normal(k_wav, (B, 1, L), dtype=jnp.float32)          # NCL like PyTorch
    text = jax.random.randint(k_txt, (B, Tc), 0, model.cond_vocab, dtype=jnp.int32)
    batch = {'audio': wav, 'text': text}

    out = model.forward(batch)
    jax.block_until_ready(out['loss'])
    jax.block_until_ready(out['logits'])
    assert out['logits'].shape == (B, 32, model.V)
    assert bool(jnp.isfinite(out['loss']))
    print("KERNEL_OK")
</pallas_src>

<mosaic_0001>
module attributes {stable_mosaic.version = 11 : i64} {
  func.func @_dalle_fused_kernel(%arg0: memref<64x1xi32, #tpu.memory_space<vmem>>, %arg1: memref<32x16xf32, #tpu.memory_space<vmem>>, %arg2: memref<64x128xf32, #tpu.memory_space<vmem>>, %arg3: memref<16x32xbf16, #tpu.memory_space<vmem>>, %arg4: memref<1x32xf32, #tpu.memory_space<vmem>>, %arg5: memref<2x128x32xbf16, #tpu.memory_space<vmem>>, %arg6: memref<2x32x128xbf16, #tpu.memory_space<vmem>>, %arg7: memref<2x1x128xf32, #tpu.memory_space<vmem>>, %arg8: memref<256x64xbf16, #tpu.memory_space<vmem>>, %arg9: memref<128x64xf32, #tpu.memory_space<vmem>>, %arg10: memref<1x64xf32, #tpu.memory_space<vmem>>, %arg11: memref<1x64xf32, #tpu.memory_space<vmem>>, %arg12: memref<64x64xbf16, #tpu.memory_space<vmem>>, %arg13: memref<1x64xf32, #tpu.memory_space<vmem>>, %arg14: memref<64x64xbf16, #tpu.memory_space<vmem>>, %arg15: memref<1x64xf32, #tpu.memory_space<vmem>>, %arg16: memref<64x64xbf16, #tpu.memory_space<vmem>>, %arg17: memref<1x64xf32, #tpu.memory_space<vmem>>, %arg18: memref<64x64xbf16, #tpu.memory_space<vmem>>, %arg19: memref<1x64xf32, #tpu.memory_space<vmem>>, %arg20: memref<1x64xf32, #tpu.memory_space<vmem>>, %arg21: memref<1x64xf32, #tpu.memory_space<vmem>>, %arg22: memref<64x128xbf16, #tpu.memory_space<vmem>>, %arg23: memref<1x128xf32, #tpu.memory_space<vmem>>, %arg24: memref<128x64xbf16, #tpu.memory_space<vmem>>, %arg25: memref<1x64xf32, #tpu.memory_space<vmem>>, %arg26: memref<64x128xbf16, #tpu.memory_space<vmem>>, %arg27: memref<1x128xf32, #tpu.memory_space<vmem>>, %arg28: memref<64x128xbf16, #tpu.memory_space<vmem>>, %arg29: memref<8x128xf32, #tpu.memory_space<vmem>>) attributes {dimension_semantics = [], scalar_prefetch = 0 : i64, scratch_operands = 0 : i64, tpu.core_type = #tpu.core_type<tc>} {
    %c0 = arith.constant 0 : index
    %c0_0 = arith.constant 0 : index
    %0 = vector.load %arg1[%c0, %c0_0] : memref<32x16xf32, #tpu.memory_space<vmem>>, vector<32x16xf32>
    %1 = arith.truncf %0 : vector<32x16xf32> to vector<32x16xbf16>
    %c0_1 = arith.constant 0 : index
    %c0_2 = arith.constant 0 : index
    %2 = vector.load %arg3[%c0_1, %c0_2] : memref<16x32xbf16, #tpu.memory_space<vmem>>, vector<16x32xbf16>
    %cst = arith.constant dense<0.000000e+00> : vector<32x32xf32>
    %3 = tpu.matmul %1, %2, %cst {dimension_numbers = #tpu.dot_dimension_numbers<[1], [0], [0], [1], [0, 0, 1, 1], [], []>} : vector<32x16xbf16>, vector<16x32xbf16>, vector<32x32xf32> -> vector<32x32xf32>
    %c0_3 = arith.constant 0 : index
    %c0_4 = arith.constant 0 : index
    %4 = vector.load %arg4[%c0_3, %c0_4] : memref<1x32xf32, #tpu.memory_space<vmem>>, vector<1x32xf32>
    %5 = vector.broadcast %4 : vector<1x32xf32> to vector<32x32xf32>
    %6 = arith.addf %3, %5 : vector<32x32xf32>
    %7 = tpu.iota {dimensions = array<i32: 1>} : vector<32x128xi32>
    %c0_5 = arith.constant 0 : index
    %c0_6 = arith.constant 0 : index
    %c0_7 = arith.constant 0 : index
    %8 = vector.load %arg7[%c0_5, %c0_6, %c0_7] : memref<2x1x128xf32, #tpu.memory_space<vmem>>, vector<1x1x128xf32>
    %9 = vector.shape_cast %8 : vector<1x1x128xf32> to vector<1x128xf32>
    %10 = arith.truncf %6 : vector<32x32xf32> to vector<32x32xbf16>
    %c0_8 = arith.constant 0 : index
    %c0_9 = arith.constant 0 : index
    %c0_10 = arith.constant 0 : index
    %11 = vector.load %arg6[%c0_8, %c0_9, %c0_10] : memref<2x32x128xbf16, #tpu.memory_space<vmem>>, vector<1x32x128xbf16>
    %12 = vector.shape_cast %11 : vector<1x32x128xbf16> to vector<32x128xbf16>
    %cst_11 = arith.constant dense<0.000000e+00> : vector<32x128xf32>
    %13 = tpu.matmul %10, %12, %cst_11 {dimension_numbers = #tpu.dot_dimension_numbers<[1], [0], [0], [1], [0, 0, 1, 1], [], []>} : vector<32x32xbf16>, vector<32x128xbf16>, vector<32x128xf32> -> vector<32x128xf32>
    %cst_12 = arith.constant 2.000000e+00 : f32
    %14 = vector.broadcast %cst_12 : f32 to vector<32x128xf32>
    %15 = arith.mulf %14, %13 : vector<32x128xf32>
    %16 = vector.broadcast %9 : vector<1x128xf32> to vector<32x128xf32>
    %17 = arith.subf %16, %15 : vector<32x128xf32>
    %cst_13 = arith.constant dense<0x7F800000> : vector<32xf32>
    %18 = vector.multi_reduction <minimumf>, %17, %cst_13 [1] : vector<32x128xf32> to vector<32xf32>
    %19 = vector.shape_cast %18 : vector<32xf32> to vector<32x1xf32>
    %20 = vector.broadcast %19 : vector<32x1xf32> to vector<32x128xf32>
    %21 = arith.cmpf ole, %17, %20 : vector<32x128xf32>
    %c128_i32 = arith.constant 128 : i32
    %22 = vector.broadcast %c128_i32 : i32 to vector<32x128xi32>
    %23 = arith.select %21, %7, %22 : vector<32x128xi1>, vector<32x128xi32>
    %cst_14 = arith.constant dense<2147483647> : vector<32xi32>
    %24 = vector.multi_reduction <minsi>, %23, %cst_14 [1] : vector<32x128xi32> to vector<32xi32>
    %25 = vector.shape_cast %24 : vector<32xi32> to vector<32x1xi32>
    %26 = vector.broadcast %25 : vector<32x1xi32> to vector<32x128xi32>
    %27 = arith.cmpi eq, %7, %26 : vector<32x128xi32>
    %28 = arith.extui %27 : vector<32x128xi1> to vector<32x128xi32>
    %29 = arith.sitofp %28 : vector<32x128xi32> to vector<32x128xf32>
    %30 = arith.truncf %29 : vector<32x128xf32> to vector<32x128xbf16>
    %c0_15 = arith.constant 0 : index
    %c0_16 = arith.constant 0 : index
    %c0_17 = arith.constant 0 : index
    %31 = vector.load %arg5[%c0_15, %c0_16, %c0_17] : memref<2x128x32xbf16, #tpu.memory_space<vmem>>, vector<1x128x32xbf16>
    %32 = vector.shape_cast %31 : vector<1x128x32xbf16> to vector<128x32xbf16>
    %cst_18 = arith.constant dense<0.000000e+00> : vector<32x32xf32>
    %33 = tpu.matmul %30, %32, %cst_18 {dimension_numbers = #tpu.dot_dimension_numbers<[1], [0], [0], [1], [0, 0, 1, 1], [], []>} : vector<32x128xbf16>, vector<128x32xbf16>, vector<32x32xf32> -> vector<32x32xf32>
    %34 = arith.subf %6, %33 : vector<32x32xf32>
    %c1 = arith.constant 1 : index
    %c0_19 = arith.constant 0 : index
    %c0_20 = arith.constant 0 : index
    %35 = vector.load %arg7[%c1, %c0_19, %c0_20] : memref<2x1x128xf32, #tpu.memory_space<vmem>>, vector<1x1x128xf32>
    %36 = vector.shape_cast %35 : vector<1x1x128xf32> to vector<1x128xf32>
    %37 = arith.truncf %34 : vector<32x32xf32> to vector<32x32xbf16>
    %c1_21 = arith.constant 1 : index
    %c0_22 = arith.constant 0 : index
    %c0_23 = arith.constant 0 : index
    %38 = vector.load %arg6[%c1_21, %c0_22, %c0_23] : memref<2x32x128xbf16, #tpu.memory_space<vmem>>, vector<1x32x128xbf16>
    %39 = vector.shape_cast %38 : vector<1x32x128xbf16> to vector<32x128xbf16>
    %cst_24 = arith.constant dense<0.000000e+00> : vector<32x128xf32>
    %40 = tpu.matmul %37, %39, %cst_24 {dimension_numbers = #tpu.dot_dimension_numbers<[1], [0], [0], [1], [0, 0, 1, 1], [], []>} : vector<32x32xbf16>, vector<32x128xbf16>, vector<32x128xf32> -> vector<32x128xf32>
    %cst_25 = arith.constant 2.000000e+00 : f32
    %41 = vector.broadcast %cst_25 : f32 to vector<32x128xf32>
    %42 = arith.mulf %41, %40 : vector<32x128xf32>
    %43 = vector.broadcast %36 : vector<1x128xf32> to vector<32x128xf32>
    %44 = arith.subf %43, %42 : vector<32x128xf32>
    %cst_26 = arith.constant dense<0x7F800000> : vector<32xf32>
    %45 = vector.multi_reduction <minimumf>, %44, %cst_26 [1] : vector<32x128xf32> to vector<32xf32>
    %46 = vector.shape_cast %45 : vector<32xf32> to vector<32x1xf32>
    %47 = vector.broadcast %46 : vector<32x1xf32> to vector<32x128xf32>
    %48 = arith.cmpf ole, %44, %47 : vector<32x128xf32>
    %c128_i32_27 = arith.constant 128 : i32
    %49 = vector.broadcast %c128_i32_27 : i32 to vector<32x128xi32>
    %50 = arith.select %48, %7, %49 : vector<32x128xi1>, vector<32x128xi32>
    %cst_28 = arith.constant dense<2147483647> : vector<32xi32>
    %51 = vector.multi_reduction <minsi>, %50, %cst_28 [1] : vector<32x128xi32> to vector<32xi32>
    %52 = vector.shape_cast %51 : vector<32xi32> to vector<32x1xi32>
    %53 = tpu.iota {dimensions = array<i32: 1>} : vector<64x256xi32>
    %54 = tpu.iota {dimensions = array<i32: 1>} : vector<32x256xi32>
    %c0_29 = arith.constant 0 : index
    %c0_30 = arith.constant 0 : index
    %55 = vector.load %arg0[%c0_29, %c0_30] : memref<64x1xi32, #tpu.memory_space<vmem>>, vector<64x1xi32>
    %56 = vector.broadcast %55 : vector<64x1xi32> to vector<64x256xi32>
    %57 = arith.cmpi eq, %56, %53 : vector<64x256xi32>
    %58 = arith.extui %57 : vector<64x256xi1> to vector<64x256xi32>
    %59 = arith.sitofp %58 : vector<64x256xi32> to vector<64x256xf32>
    %c128_i32_31 = arith.constant 128 : i32
    %60 = vector.broadcast %c128_i32_31 : i32 to vector<32x1xi32>
    %61 = arith.addi %25, %60 : vector<32x1xi32>
    %62 = vector.broadcast %61 : vector<32x1xi32> to vector<32x256xi32>
    %63 = arith.cmpi eq, %62, %54 : vector<32x256xi32>
    %64 = arith.extui %63 : vector<32x256xi1> to vector<32x256xi32>
    %65 = arith.sitofp %64 : vector<32x256xi32> to vector<32x256xf32>
    %c128_i32_32 = arith.constant 128 : i32
    %66 = vector.broadcast %c128_i32_32 : i32 to vector<32x1xi32>
    %67 = arith.addi %52, %66 : vector<32x1xi32>
    %68 = vector.broadcast %67 : vector<32x1xi32> to vector<32x256xi32>
    %69 = arith.cmpi eq, %68, %54 : vector<32x256xi32>
    %70 = arith.extui %69 : vector<32x256xi1> to vector<32x256xi32>
    %71 = arith.sitofp %70 : vector<32x256xi32> to vector<32x256xf32>
    %72 = tpu.concatenate %59, %65, %71 in 0 : vector<64x256xf32>, vector<32x256xf32>, vector<32x256xf32> -> vector<128x256xf32>
    %73 = arith.truncf %72 : vector<128x256xf32> to vector<128x256xbf16>
    %c0_33 = arith.constant 0 : index
    %c0_34 = arith.constant 0 : index
    %74 = vector.load %arg8[%c0_33, %c0_34] : memref<256x64xbf16, #tpu.memory_space<vmem>>, vector<256x64xbf16>
    %cst_35 = arith.constant dense<0.000000e+00> : vector<128x64xf32>
    %75 = tpu.matmul %73, %74, %cst_35 {dimension_numbers = #tpu.dot_dimension_numbers<[1], [0], [0], [1], [0, 0, 1, 1], [], []>} : vector<128x256xbf16>, vector<256x64xbf16>, vector<128x64xf32> -> vector<128x64xf32>
    %c0_36 = arith.constant 0 : index
    %c0_37 = arith.constant 0 : index
    %76 = vector.load %arg9[%c0_36, %c0_37] : memref<128x64xf32, #tpu.memory_space<vmem>>, vector<128x64xf32>
    %77 = arith.addf %75, %76 : vector<128x64xf32>
    %78 = vector.extract_strided_slice %77 {offsets = [0, 0], sizes = [64, 64], strides = [1, 1]} : vector<128x64xf32> to vector<64x64xf32>
    %79 = vector.extract_strided_slice %77 {offsets = [64, 0], sizes = [64, 64], strides = [1, 1]} : vector<128x64xf32> to vector<64x64xf32>
    %80 = vector.extract_strided_slice %72 {offsets = [64, 128], sizes = [64, 128], strides = [1, 1]} : vector<128x256xf32> to vector<64x128xf32>
    %c0_38 = arith.constant 0 : index
    %c0_39 = arith.constant 0 : index
    %81 = vector.load %arg10[%c0_38, %c0_39] : memref<1x64xf32, #tpu.memory_space<vmem>>, vector<1x64xf32>
    %c0_40 = arith.constant 0 : index
    %c0_41 = arith.constant 0 : index
    %82 = vector.load %arg11[%c0_40, %c0_41] : memref<1x64xf32, #tpu.memory_space<vmem>>, vector<1x64xf32>
    %cst_42 = arith.constant dense<0.000000e+00> : vector<64xf32>
    %83 = vector.multi_reduction <add>, %79, %cst_42 [1] : vector<64x64xf32> to vector<64xf32>
    %84 = vector.shape_cast %83 : vector<64xf32> to vector<64x1xf32>
    %cst_43 = arith.constant 6.400000e+01 : f32
    %85 = vector.broadcast %cst_43 : f32 to vector<64x1xf32>
    %86 = arith.divf %84, %85 : vector<64x1xf32>
    %87 = vector.broadcast %86 : vector<64x1xf32> to vector<64x64xf32>
    %88 = arith.subf %79, %87 : vector<64x64xf32>
    %89 = vector.broadcast %86 : vector<64x1xf32> to vector<64x64xf32>
    %90 = arith.subf %79, %89 : vector<64x64xf32>
    %91 = arith.mulf %88, %90 : vector<64x64xf32>
    %cst_44 = arith.constant dense<0.000000e+00> : vector<64xf32>
    %92 = vector.multi_reduction <add>, %91, %cst_44 [1] : vector<64x64xf32> to vector<64xf32>
    %93 = vector.shape_cast %92 : vector<64xf32> to vector<64x1xf32>
    %cst_45 = arith.constant 6.400000e+01 : f32
    %94 = vector.broadcast %cst_45 : f32 to vector<64x1xf32>
    %95 = arith.divf %93, %94 : vector<64x1xf32>
    %96 = vector.broadcast %86 : vector<64x1xf32> to vector<64x64xf32>
    %97 = arith.subf %79, %96 : vector<64x64xf32>
    %cst_46 = arith.constant 9.99999974E-6 : f32
    %98 = vector.broadcast %cst_46 : f32 to vector<64x1xf32>
    %99 = arith.addf %95, %98 : vector<64x1xf32>
    %100 = math.rsqrt %99 : vector<64x1xf32>
    %101 = vector.broadcast %100 : vector<64x1xf32> to vector<64x64xf32>
    %102 = arith.mulf %97, %101 : vector<64x64xf32>
    %103 = vector.broadcast %81 : vector<1x64xf32> to vector<64x64xf32>
    %104 = arith.mulf %102, %103 : vector<64x64xf32>
    %105 = vector.broadcast %82 : vector<1x64xf32> to vector<64x64xf32>
    %106 = arith.addf %104, %105 : vector<64x64xf32>
    %107 = arith.truncf %106 : vector<64x64xf32> to vector<64x64xbf16>
    %108 = arith.truncf %78 : vector<64x64xf32> to vector<64x64xbf16>
    %109 = tpu.concatenate %108, %107 in 0 : vector<64x64xbf16>, vector<64x64xbf16> -> vector<128x64xbf16>
    %c0_47 = arith.constant 0 : index
    %c0_48 = arith.constant 0 : index
    %110 = vector.load %arg12[%c0_47, %c0_48] : memref<64x64xbf16, #tpu.memory_space<vmem>>, vector<64x64xbf16>
    %cst_49 = arith.constant dense<0.000000e+00> : vector<64x64xf32>
    %111 = tpu.matmul %107, %110, %cst_49 {dimension_numbers = #tpu.dot_dimension_numbers<[1], [0], [0], [1], [0, 0, 1, 1], [], []>} : vector<64x64xbf16>, vector<64x64xbf16>, vector<64x64xf32> -> vector<64x64xf32>
    %c0_50 = arith.constant 0 : index
    %c0_51 = arith.constant 0 : index
    %112 = vector.load %arg13[%c0_50, %c0_51] : memref<1x64xf32, #tpu.memory_space<vmem>>, vector<1x64xf32>
    %113 = vector.broadcast %112 : vector<1x64xf32> to vector<64x64xf32>
    %114 = arith.addf %111, %113 : vector<64x64xf32>
    %115 = arith.truncf %114 : vector<64x64xf32> to vector<64x64xbf16>
    %c0_52 = arith.constant 0 : index
    %c0_53 = arith.constant 0 : index
    %116 = vector.load %arg14[%c0_52, %c0_53] : memref<64x64xbf16, #tpu.memory_space<vmem>>, vector<64x64xbf16>
    %cst_54 = arith.constant dense<0.000000e+00> : vector<128x64xf32>
    %117 = tpu.matmul %109, %116, %cst_54 {dimension_numbers = #tpu.dot_dimension_numbers<[1], [0], [0], [1], [0, 0, 1, 1], [], []>} : vector<128x64xbf16>, vector<64x64xbf16>, vector<128x64xf32> -> vector<128x64xf32>
    %c0_55 = arith.constant 0 : index
    %c0_56 = arith.constant 0 : index
    %118 = vector.load %arg15[%c0_55, %c0_56] : memref<1x64xf32, #tpu.memory_space<vmem>>, vector<1x64xf32>
    %119 = vector.broadcast %118 : vector<1x64xf32> to vector<128x64xf32>
    %120 = arith.addf %117, %119 : vector<128x64xf32>
    %121 = arith.truncf %120 : vector<128x64xf32> to vector<128x64xbf16>
    %c0_57 = arith.constant 0 : index
    %c0_58 = arith.constant 0 : index
    %122 = vector.load %arg16[%c0_57, %c0_58] : memref<64x64xbf16, #tpu.memory_space<vmem>>, vector<64x64xbf16>
    %cst_59 = arith.constant dense<0.000000e+00> : vector<128x64xf32>
    %123 = tpu.matmul %109, %122, %cst_59 {dimension_numbers = #tpu.dot_dimension_numbers<[1], [0], [0], [1], [0, 0, 1, 1], [], []>} : vector<128x64xbf16>, vector<64x64xbf16>, vector<128x64xf32> -> vector<128x64xf32>
    %c0_60 = arith.constant 0 : index
    %c0_61 = arith.constant 0 : index
    %124 = vector.load %arg17[%c0_60, %c0_61] : memref<1x64xf32, #tpu.memory_space<vmem>>, vector<1x64xf32>
    %125 = vector.broadcast %124 : vector<1x64xf32> to vector<128x64xf32>
    %126 = arith.addf %123, %125 : vector<128x64xf32>
    %127 = arith.truncf %126 : vector<128x64xf32> to vector<128x64xbf16>
    %cst_62 = arith.constant dense<0.000000e+00> : vector<64x128xf32>
    %128 = tpu.matmul %115, %121, %cst_62 {dimension_numbers = #tpu.dot_dimension_numbers<[1], [1], [0], [0], [0, 0, 1, 0], [], []>} : vector<64x64xbf16>, vector<128x64xbf16>, vector<64x128xf32> -> vector<64x128xf32>
    %cst_63 = arith.constant 1.250000e-01 : f32
    %129 = vector.broadcast %cst_63 : f32 to vector<64x128xf32>
    %130 = arith.mulf %128, %129 : vector<64x128xf32>
    %c0_64 = arith.constant 0 : index
    %c0_65 = arith.constant 0 : index
    %131 = vector.load %arg2[%c0_64, %c0_65] : memref<64x128xf32, #tpu.memory_space<vmem>>, vector<64x128xf32>
    %132 = arith.addf %130, %131 : vector<64x128xf32>
    %cst_66 = arith.constant dense<0xFF800000> : vector<64xf32>
    %133 = vector.multi_reduction <maximumf>, %132, %cst_66 [1] : vector<64x128xf32> to vector<64xf32>
    %134 = vector.shape_cast %133 : vector<64xf32> to vector<64x1xf32>
    %135 = vector.broadcast %134 : vector<64x1xf32> to vector<64x128xf32>
    %136 = arith.subf %132, %135 : vector<64x128xf32>
    %137 = math.exp %136 : vector<64x128xf32>
    %cst_67 = arith.constant dense<0.000000e+00> : vector<64xf32>
    %138 = vector.multi_reduction <add>, %137, %cst_67 [1] : vector<64x128xf32> to vector<64xf32>
    %139 = vector.shape_cast %138 : vector<64xf32> to vector<64x1xf32>
    %140 = tpu.reciprocal %139 {approx = true} : vector<64x1xf32> -> vector<64x1xf32>
    %141 = vector.broadcast %140 : vector<64x1xf32> to vector<64x128xf32>
    %142 = arith.mulf %137, %141 : vector<64x128xf32>
    %143 = arith.truncf %142 : vector<64x128xf32> to vector<64x128xbf16>
    %cst_68 = arith.constant dense<0.000000e+00> : vector<64x64xf32>
    %144 = tpu.matmul %143, %127, %cst_68 {dimension_numbers = #tpu.dot_dimension_numbers<[1], [0], [0], [1], [0, 0, 1, 1], [], []>} : vector<64x128xbf16>, vector<128x64xbf16>, vector<64x64xf32> -> vector<64x64xf32>
    %145 = arith.truncf %144 : vector<64x64xf32> to vector<64x64xbf16>
    %c0_69 = arith.constant 0 : index
    %c0_70 = arith.constant 0 : index
    %146 = vector.load %arg18[%c0_69, %c0_70] : memref<64x64xbf16, #tpu.memory_space<vmem>>, vector<64x64xbf16>
    %cst_71 = arith.constant dense<0.000000e+00> : vector<64x64xf32>
    %147 = tpu.matmul %145, %146, %cst_71 {dimension_numbers = #tpu.dot_dimension_numbers<[1], [0], [0], [1], [0, 0, 1, 1], [], []>} : vector<64x64xbf16>, vector<64x64xbf16>, vector<64x64xf32> -> vector<64x64xf32>
    %148 = arith.addf %79, %147 : vector<64x64xf32>
    %c0_72 = arith.constant 0 : index
    %c0_73 = arith.constant 0 : index
    %149 = vector.load %arg19[%c0_72, %c0_73] : memref<1x64xf32, #tpu.memory_space<vmem>>, vector<1x64xf32>
    %150 = vector.broadcast %149 : vector<1x64xf32> to vector<64x64xf32>
    %151 = arith.addf %148, %150 : vector<64x64xf32>
    %c0_74 = arith.constant 0 : index
    %c0_75 = arith.constant 0 : index
    %152 = vector.load %arg20[%c0_74, %c0_75] : memref<1x64xf32, #tpu.memory_space<vmem>>, vector<1x64xf32>
    %c0_76 = arith.constant 0 : index
    %c0_77 = arith.constant 0 : index
    %153 = vector.load %arg21[%c0_76, %c0_77] : memref<1x64xf32, #tpu.memory_space<vmem>>, vector<1x64xf32>
    %cst_78 = arith.constant dense<0.000000e+00> : vector<64xf32>
    %154 = vector.multi_reduction <add>, %151, %cst_78 [1] : vector<64x64xf32> to vector<64xf32>
    %155 = vector.shape_cast %154 : vector<64xf32> to vector<64x1xf32>
    %cst_79 = arith.constant 6.400000e+01 : f32
    %156 = vector.broadcast %cst_79 : f32 to vector<64x1xf32>
    %157 = arith.divf %155, %156 : vector<64x1xf32>
    %158 = vector.broadcast %157 : vector<64x1xf32> to vector<64x64xf32>
    %159 = arith.subf %151, %158 : vector<64x64xf32>
    %160 = vector.broadcast %157 : vector<64x1xf32> to vector<64x64xf32>
    %161 = arith.subf %151, %160 : vector<64x64xf32>
    %162 = arith.mulf %159, %161 : vector<64x64xf32>
    %cst_80 = arith.constant dense<0.000000e+00> : vector<64xf32>
    %163 = vector.multi_reduction <add>, %162, %cst_80 [1] : vector<64x64xf32> to vector<64xf32>
    %164 = vector.shape_cast %163 : vector<64xf32> to vector<64x1xf32>
    %cst_81 = arith.constant 6.400000e+01 : f32
    %165 = vector.broadcast %cst_81 : f32 to vector<64x1xf32>
    %166 = arith.divf %164, %165 : vector<64x1xf32>
    %167 = vector.broadcast %157 : vector<64x1xf32> to vector<64x64xf32>
    %168 = arith.subf %151, %167 : vector<64x64xf32>
    %cst_82 = arith.constant 9.99999974E-6 : f32
    %169 = vector.broadcast %cst_82 : f32 to vector<64x1xf32>
    %170 = arith.addf %166, %169 : vector<64x1xf32>
    %171 = math.rsqrt %170 : vector<64x1xf32>
    %172 = vector.broadcast %171 : vector<64x1xf32> to vector<64x64xf32>
    %173 = arith.mulf %168, %172 : vector<64x64xf32>
    %174 = vector.broadcast %152 : vector<1x64xf32> to vector<64x64xf32>
    %175 = arith.mulf %173, %174 : vector<64x64xf32>
    %176 = vector.broadcast %153 : vector<1x64xf32> to vector<64x64xf32>
    %177 = arith.addf %175, %176 : vector<64x64xf32>
    %178 = arith.truncf %177 : vector<64x64xf32> to vector<64x64xbf16>
    %c0_83 = arith.constant 0 : index
    %c0_84 = arith.constant 0 : index
    %179 = vector.load %arg22[%c0_83, %c0_84] : memref<64x128xbf16, #tpu.memory_space<vmem>>, vector<64x128xbf16>
    %cst_85 = arith.constant dense<0.000000e+00> : vector<64x128xf32>
    %180 = tpu.matmul %178, %179, %cst_85 {dimension_numbers = #tpu.dot_dimension_numbers<[1], [0], [0], [1], [0, 0, 1, 1], [], []>} : vector<64x64xbf16>, vector<64x128xbf16>, vector<64x128xf32> -> vector<64x128xf32>
    %c0_86 = arith.constant 0 : index
    %c0_87 = arith.constant 0 : index
    %181 = vector.load %arg23[%c0_86, %c0_87] : memref<1x128xf32, #tpu.memory_space<vmem>>, vector<1x128xf32>
    %182 = vector.broadcast %181 : vector<1x128xf32> to vector<64x128xf32>
    %183 = arith.addf %180, %182 : vector<64x128xf32>
    %184 = arith.mulf %183, %183 : vector<64x128xf32>
    %185 = arith.mulf %183, %184 : vector<64x128xf32>
    %cst_88 = arith.constant 4.471500e-02 : f32
    %186 = vector.broadcast %cst_88 : f32 to vector<64x128xf32>
    %187 = arith.mulf %186, %185 : vector<64x128xf32>
    %188 = arith.addf %183, %187 : vector<64x128xf32>
    %cst_89 = arith.constant 0.797884583 : f32
    %189 = vector.broadcast %cst_89 : f32 to vector<64x128xf32>
    %190 = arith.mulf %189, %188 : vector<64x128xf32>
    %191 = math.tanh %190 : vector<64x128xf32>
    %cst_90 = arith.constant 1.000000e+00 : f32
    %192 = vector.broadcast %cst_90 : f32 to vector<64x128xf32>
    %193 = arith.addf %192, %191 : vector<64x128xf32>
    %cst_91 = arith.constant 5.000000e-01 : f32
    %194 = vector.broadcast %cst_91 : f32 to vector<64x128xf32>
    %195 = arith.mulf %194, %193 : vector<64x128xf32>
    %196 = arith.mulf %183, %195 : vector<64x128xf32>
    %197 = arith.truncf %196 : vector<64x128xf32> to vector<64x128xbf16>
    %c0_92 = arith.constant 0 : index
    %c0_93 = arith.constant 0 : index
    %198 = vector.load %arg24[%c0_92, %c0_93] : memref<128x64xbf16, #tpu.memory_space<vmem>>, vector<128x64xbf16>
    %cst_94 = arith.constant dense<0.000000e+00> : vector<64x64xf32>
    %199 = tpu.matmul %197, %198, %cst_94 {dimension_numbers = #tpu.dot_dimension_numbers<[1], [0], [0], [1], [0, 0, 1, 1], [], []>} : vector<64x128xbf16>, vector<128x64xbf16>, vector<64x64xf32> -> vector<64x64xf32>
    %200 = arith.addf %151, %199 : vector<64x64xf32>
    %c0_95 = arith.constant 0 : index
    %c0_96 = arith.constant 0 : index
    %201 = vector.load %arg25[%c0_95, %c0_96] : memref<1x64xf32, #tpu.memory_space<vmem>>, vector<1x64xf32>
    %202 = vector.broadcast %201 : vector<1x64xf32> to vector<64x64xf32>
    %203 = arith.addf %200, %202 : vector<64x64xf32>
    %204 = arith.truncf %203 : vector<64x64xf32> to vector<64x64xbf16>
    %c0_97 = arith.constant 0 : index
    %c0_98 = arith.constant 0 : index
    %205 = vector.load %arg26[%c0_97, %c0_98] : memref<64x128xbf16, #tpu.memory_space<vmem>>, vector<64x128xbf16>
    %cst_99 = arith.constant dense<0.000000e+00> : vector<64x128xf32>
    %206 = tpu.matmul %204, %205, %cst_99 {dimension_numbers = #tpu.dot_dimension_numbers<[1], [0], [0], [1], [0, 0, 1, 1], [], []>} : vector<64x64xbf16>, vector<64x128xbf16>, vector<64x128xf32> -> vector<64x128xf32>
    %c0_100 = arith.constant 0 : index
    %c0_101 = arith.constant 0 : index
    %207 = vector.load %arg27[%c0_100, %c0_101] : memref<1x128xf32, #tpu.memory_space<vmem>>, vector<1x128xf32>
    %208 = vector.broadcast %207 : vector<1x128xf32> to vector<64x128xf32>
    %209 = arith.addf %206, %208 : vector<64x128xf32>
    %210 = arith.truncf %209 : vector<64x128xf32> to vector<64x128xbf16>
    %c0_102 = arith.constant 0 : index
    %c0_103 = arith.constant 0 : index
    %211 = vector.load %arg28[%c0_102, %c0_103] : memref<64x128xbf16, #tpu.memory_space<vmem>>, vector<64x128xbf16>
    tpu.vector_store %arg28[%c0_102, %c0_103], %210 {strides = array<i32>} : memref<64x128xbf16, #tpu.memory_space<vmem>>, vector<64x128xbf16>,
    %cst_104 = arith.constant dense<0xFF800000> : vector<64xf32>
    %212 = vector.multi_reduction <maximumf>, %209, %cst_104 [1] : vector<64x128xf32> to vector<64xf32>
    %213 = vector.shape_cast %212 : vector<64xf32> to vector<64x1xf32>
    %214 = vector.broadcast %213 : vector<64x1xf32> to vector<64x128xf32>
    %215 = arith.subf %209, %214 : vector<64x128xf32>
    %216 = math.exp %215 : vector<64x128xf32>
    %cst_105 = arith.constant dense<0.000000e+00> : vector<64xf32>
    %217 = vector.multi_reduction <add>, %216, %cst_105 [1] : vector<64x128xf32> to vector<64xf32>
    %218 = vector.shape_cast %217 : vector<64xf32> to vector<64x1xf32>
    %219 = math.log %218 : vector<64x1xf32>
    %220 = arith.addf %213, %219 : vector<64x1xf32>
    %221 = arith.mulf %209, %80 : vector<64x128xf32>
    %cst_106 = arith.constant dense<0.000000e+00> : vector<64xf32>
    %222 = vector.multi_reduction <add>, %221, %cst_106 [1] : vector<64x128xf32> to vector<64xf32>
    %223 = vector.shape_cast %222 : vector<64xf32> to vector<64x1xf32>
    %224 = arith.subf %220, %223 : vector<64x1xf32>
    %cst_107 = arith.constant dense<0.000000e+00> : vector<1xf32>
    %225 = vector.multi_reduction <add>, %224, %cst_107 [0] : vector<64x1xf32> to vector<1xf32>
    %226 = vector.shape_cast %225 : vector<1xf32> to vector<1x1xf32>
    %227 = vector.shape_cast %226 : vector<1x1xf32> to vector<1x1xf32>
    %228 = vector.broadcast %227 : vector<1x1xf32> to vector<8x128xf32>
    %c0_108 = arith.constant 0 : index
    %c0_109 = arith.constant 0 : index
    %229 = vector.load %arg29[%c0_108, %c0_109] : memref<8x128xf32, #tpu.memory_space<vmem>>, vector<8x128xf32>
    tpu.vector_store %arg29[%c0_108, %c0_109], %228 {strides = array<i32>} : memref<8x128xf32, #tpu.memory_space<vmem>>, vector<8x128xf32>,
    return
  }
}

</mosaic_0001>

<bundles_post_ra>
// kernel: tpu_custom_call.1
= control target key start
LH: loop header
LB: loop body
LE: loop exit
PB: predicated region body
PF: predicated region fallthrough
CT: control target
= control target key end

     0   :  { %s3747_s6 = smov 1   ;;  %s3748_s10 = smov 2   ;;  %s4719_s0 = inlined_call_operand.smem [shape: u32[30], index: -1, kind: input, shape index: {}] }
   0x1   :  { %s3791_s5 = sld [smem:[%s4719_s0]]   ;;  %s3749_s14 = smov 3  }
   0x2   :  { %s3796_s9 = sld [smem:[%s4719_s0 + %s3747_s6]]   ;;  %s3750_s18 = smov 4  }
   0x3   :  { %s3801_s13 = sld [smem:[%s4719_s0 + %s3748_s10]]   ;;  %s3751_s22 = smov 5  }
   0x4   :  { %s3806_s17 = sld [smem:[%s4719_s0 + %s3749_s14]]   ;;  %s3752_s26 = smov 6  }
   0x5   :  { %s3811_s21 = sld [smem:[%s4719_s0 + %s3750_s18]]   ;;  %s3753_s30 = smov 7  }
   0x6   :  { %s3816_s25 = sld [smem:[%s4719_s0 + %s3751_s22]]   ;;  %s3754_s4 = smov 8  }
   0x7   :  { %s3821_s29 = sld [smem:[%s4719_s0 + %s3752_s26]]   ;;  %s3755_s10 = smov 9  }
   0x8   :  { %s3826_s3 = sld [smem:[%s4719_s0 + %s3753_s30]]   ;;  %s3756_s15 = smov 10  }
   0x9   :  { %4728 = sst [smem:[#allocation8_spill]] %s3801_s13  ;;  %s3757_s20 = smov 11  }
   0xa   :  { %s3831_s8 = sld [smem:[%s4719_s0 + %s3754_s4]]   ;;  %s3758_s26 = smov 12  }
   0xb   :  { %s3836_s14 = sld [smem:[%s4719_s0 + %s3755_s10]]   ;;  %s3759_s1 = smov 13  }
   0xc   :  { %s3841_s19 = sld [smem:[%s4719_s0 + %s3756_s15]]   ;;  %s3760_s7 = smov 14  }
   0xd   :  { %s3846_s24 = sld [smem:[%s4719_s0 + %s3757_s20]]   ;;  %s3761_s15 = smov 15  }
   0xe   :  { %s3851_s30 = sld [smem:[%s4719_s0 + %s3758_s26]]   ;;  %s3762_s22 = smov 16  }
   0xf   :  { %s3856_s6 = sld [smem:[%s4719_s0 + %s3759_s1]]   ;;  %s3763_s28 = smov 17  }
  0x10   :  { %s3861_s12 = sld [smem:[%s4719_s0 + %s3760_s7]]   ;;  %s3764_s7 = smov 18  }
  0x11   :  { %s3866_s20 = sld [smem:[%s4719_s0 + %s3761_s15]]   ;;  %s3765_s15 = smov 19  }
  0x12   :  { %s3871_s27 = sld [smem:[%s4719_s0 + %s3762_s22]]   ;;  %s3766_s22 = smov 20  }
  0x13   :  { %s3876_s4 = sld [smem:[%s4719_s0 + %s3763_s28]]   ;;  %s3767_s28 = smov 21  }
  0x14   :  { %s3881_s13 = sld [smem:[%s4719_s0 + %s3764_s7]]   ;;  %s3768_s7 = smov 22  }
  0x15   :  { %4729 = sst [smem:[#allocation9_spill]] %s3856_s6 }
  0x16   :  { %s3891_s6 = sld [smem:[%s4719_s0 + %s3766_s22]]   ;;  %s3770_s22 = smov 24  }
  0x17   :  { %4730 = sst [smem:[#allocation10_spill]] %s3866_s20 }
  0x18   :  { %s3886_s20 = sld [smem:[%s4719_s0 + %s3765_s15]]   ;;  %s3769_s15 = smov 23  }
  0x19   :  { %4731 = sst [smem:[#allocation11_spill]] %s3876_s4 }
  0x1a   :  { %4732 = sst [smem:[#allocation12_spill]] %s3881_s13 }
  0x1b   :  { %s3896_s4 = sld [smem:[%s4719_s0 + %s3767_s28]]   ;;  %s3771_s28 = smov 25  }
  0x1c   :  { %4734 = sst [smem:[#allocation14_spill]] %s3891_s6 }
  0x1d   :  { %s3901_s13 = sld [smem:[%s4719_s0 + %s3768_s7]]   ;;  %s3772_s7 = smov 26  }
  0x1e   :  { %4733 = sst [smem:[#allocation13_spill]] %s3886_s20 }
  0x1f   :  { %s3906_s20 = sld [smem:[%s4719_s0 + %s3769_s15]]   ;;  %s3773_s15 = smov 27  }
  0x20   :  { %s3911_s6 = sld [smem:[%s4719_s0 + %s3770_s22]]   ;;  %s3774_s22 = smov 28  }
  0x21   :  { %4735 = sst [smem:[#allocation15_spill]] %s3896_s4 }
  0x22   :  { %s3916_s4 = sld [smem:[%s4719_s0 + %s3771_s28]]   ;;  %s3775_s28 = smov 29  }
  0x23   :  { %4736 = sst [smem:[#allocation16_spill]] %s3901_s13 }
  0x24   :  { %s3921_s13 = sld [smem:[%s4719_s0 + %s3772_s7]]  }
  0x25   :  { %4737 = sst [smem:[#allocation17_spill]] %s3906_s20 }
  0x26   :  { %4738 = sst [smem:[#allocation18_spill]] %s3911_s6 }
  0x27   :  { %s3926_s20 = sld [smem:[%s4719_s0 + %s3773_s15]]  }
  0x28   :  { %4739 = sst [smem:[#allocation19_spill]] %s3916_s4 }
  0x29   :  { %s3931_s6 = sld [smem:[%s4719_s0 + %s3774_s22]]  }
  0x2a   :  { %s3936_s4 = sld [smem:[%s4719_s0 + %s3775_s28]]  }
  0x2b   :  { %65 = vsyncpa [#allocation3], 0  ;;  %v3526_v0 = vld [vmem:[%s3806_s17] sm:$0xff]   ;;  %v125_v2 = vld [vmem:[%s3796_s9 + $0x8] sm:$0xff]  ;;  %vm145_vm0 = vcmask 130048  }
  0x2c   :  { %v124_v1 = vld [vmem:[%s3796_s9] sm:$0xff]  ;;  %v126_v3 = vld [vmem:[%s3796_s9 + $0x10] sm:$0xff]  ;;  %3254 = vmatprep.subr.bf16.mxu0 %v3526_v0  ;;  %v127_v5 = vld [vmem:[%s3796_s9 + $0x18] sm:$0xff] }
  0x2d   :  { %v128_v4 = vpack.c.bf16 %v125_v2, %v124_v1  ;;  %3255 = vmatpush3.bf16.msra.mxu0 %v3526_v0  ;;  %v129_v6 = vpack.c.bf16 %v127_v5, %v126_v3 }
  0x2f   :  { %3256 = vmatprep.mubr.msk.bf16.mxu0 %vm145_vm0, %v128_v4 }
  0x30   :  { %3257 = vmatmul.mubr.msk.bf16.vlgmr.msra.gmra.mrb[0].mxu0 %vm145_vm0, %v129_v6 }
  0x31   :  { %66 = vsyncpa [#allocation5], 0  ;;  %v3527_v7 = vld [vmem:[%s3821_s29] sm:$0xff]   ;;  %v3528_v8 = vld [vmem:[%s3821_s29 + $0x8] sm:$0xff]   ;;  %vm222_vm1 = vcmask 261120   ;;  %v201_v33 = vlaneseq  ;;  %s4748_s0 = sld [smem:[#allocation9_spill]] }
  0x32   :  { %3260 = vmatprep.subr.bf16.mxu1 %v3527_v7  ;;  %v2844_v10 = vld [vmem:[%s3811_s21] ss:$0 sm:$0xff]  ;;  %v3530_v52 = vld [vmem:[%s3816_s25 + $0x8] sm:$0xff]   ;;  %v3531_v53 = vld [vmem:[%s3816_s25 + $0x10] sm:$0xff]   ;;  %s4750_s9 = sld [smem:[#allocation11_spill]]  ;;  %s4751_s17 = sld [smem:[#allocation8_spill]] }
  0x33   :  { %3261 = vmatpush3.bf16.msra.mxu1 %v3527_v7  ;;  %v2852_v21 = vld [vmem:[%s3826_s3] ss:$0 sm:$0xff]  ;;  %v3961_v34 = vand.u32 127, %v201_v33  ;;  %v3532_v54 = vld [vmem:[%s3816_s25 + $0x18] sm:$0xff]   ;;  %s4752_s21 = sld [smem:[#allocation12_spill]] }
  0x34   :  { %3262 = vmatprep.subr.bf16.mxu1 %v3528_v8  ;;  %v3529_v51 = vld [vmem:[%s3816_s25] sm:$0xff]  }
  0x35   :  { %3268 = vmatprep.subr.bf16.mxu0 %v3529_v51  ;;  %v3533_v55 = vld [vmem:[%s3816_s25 + $0x20] sm:$0xff]  }
  0x36   :  { %3269 = vmatpush3.bf16.msra.mxu0 %v3529_v51 }
  0x37   :  { %3263 = vmatpush3.bf16.msra.mxu1 %v3528_v8  ;;  %3270 = vmatprep.subr.bf16.mxu0 %v3530_v52  ;;  %v3534_v8 = vld [vmem:[%s3816_s25 + $0x28] sm:$0xff]  }
  0x3a   :  { %3271 = vmatpush3.bf16.msra.mxu0 %v3530_v52 }
  0x3b   :  { %3272 = vmatprep.subr.bf16.mxu0 %v3531_v53 }
  0x3e   :  { %3273 = vmatpush3.bf16.msra.mxu0 %v3531_v53 }
  0x3f   :  { %3274 = vmatprep.subr.bf16.mxu0 %v3532_v54 }
  0x42   :  { %3275 = vmatpush3.bf16.msra.mxu0 %v3532_v54 }
  0x43   :  { %3276 = vmatprep.subr.bf16.mxu0 %v3533_v55 }
  0x46   :  { %3277 = vmatpush3.bf16.msra.mxu0 %v3533_v55 }
  0x47   :  { %3278 = vmatprep.subr.bf16.mxu0 %v3534_v8 }
  0x4a   :  { %3279 = vmatpush3.bf16.msra.mxu0 %v3534_v8  ;;  %v3543_v8 = vld [vmem:[%s3831_s8 + $0x50] sm:$0xff]  }
 0x103   :  { %v3258_v9 = vpop.f32.mrb[0].mxu0 }
 0x104   :  { %v186_v11 = vpop.f32.mrb[1].mxu0  ;;  %v3952_v17 = vadd.f32 %v3258_v9, %v2844_v10  ;;  %v3535_v9 = vld [vmem:[%s3816_s25 + $0x30] sm:$0xff]  }
 0x105   :  { %v3259_v12 = vpop.f32.mrb[2].mxu0  ;;  %v3948_v15 = vadd.f32 %v2844_v10, %v186_v11  ;;  %3280 = vmatprep.subr.bf16.mxu0 %v3535_v9 }
 0x106   :  { %v3946_v13 = vadd.f32 %v3259_v12, %v2844_v10  ;;  %v189_v14 = vpop.f32.mrb[3].mxu0  ;;  %3281 = vmatpush3.bf16.msra.mxu0 %v3535_v9  ;;  %v3544_v9 = vld [vmem:[%s3831_s8 + $0x10] sm:$0xff]  }
 0x107   :  { %v3950_v16 = vadd.f32 %v2844_v10, %v189_v14  ;;  %v3536_v10 = vld [vmem:[%s3816_s25 + $0x38] sm:$0xff]   ;;  %s4753_s25 = sld [smem:[#allocation13_spill]] }
 0x108   :  { %v205_v19 = vpack.c.bf16 %v3946_v13, %v3952_v17  ;;  %3282 = vmatprep.subr.bf16.mxu0 %v3536_v10 }
 0x109   :  { %v204_v18 = vpack.c.bf16 %v3950_v16, %v3948_v15 }
 0x10a   :  { %3283 = vmatpush3.bf16.msra.mxu0 %v3536_v10  ;;  %v3545_v10 = vld [vmem:[%s3831_s8 + $0x58] sm:$0xff]  }
 0x10b   :  { %3264 = vmatprep.mubr.msk.bf16.mxu1 %vm222_vm1, %v204_v18 }
 0x10c   :  { %3265 = vmatmul.mubr.msk.bf16.vlgmr.msra.gmra.mrb[0].mxu1 %vm222_vm1, %v205_v19 }
 0x1df   :  { %v3266_v20 = vpop.f32.mrb[0].mxu1 }
 0x1e0   :  { %v280_v22 = vmul.f32 2.0, %v3266_v20  ;;  %v263_v23 = vpop.f32.mrb[1].mxu1 }
 0x1e1   :  { %v278_v24 = vmul.f32 2.0, %v263_v23  ;;  %v3267_v25 = vpop.f32.mrb[2].mxu1 }
 0x1e2   :  { %v281_v26 = vmul.f32 2.0, %v3267_v25  ;;  %v266_v27 = vpop.f32.mrb[3].mxu1  ;;  %v290_v28 = vsub.f32 %v2852_v21, %v280_v22 }
 0x1e3   :  { %v279_v29 = vmul.f32 2.0, %v266_v27  ;;  %v288_v30 = vsub.f32 %v2852_v21, %v278_v24 }
 0x1e4   :  { %296 = vmin.xlane.f32.xlu1 %v290_v28  ;;  %v291_v31 = vsub.f32 %v2852_v21, %v281_v26 }
 0x1e5   :  { %292 = vmin.xlane.f32.xlu0 %v288_v30  ;;  %v289_v32 = vsub.f32 %v2852_v21, %v279_v29 }
 0x1e8   :  { %298 = vmin.xlane.f32.xlu1 %v291_v31 }
 0x1e9   :  { %294 = vmin.xlane.f32.xlu0 %v289_v32 }
 0x271   :  { %v297_v35 = vpop.xlane.xlu1 %296 }
 0x272   :  { %vm302_vm2 = vcmp.le.f32.partialorder %v290_v28, %v297_v35  ;;  %v293_v36 = vpop.xlane.xlu0 %292 }
 0x273   :  { %vm300_vm3 = vcmp.le.f32.partialorder %v288_v30, %v293_v36  ;;  %v306_v37 = vsel %vm302_vm2, %v3961_v34, 128  ;;  %v3978_v30 = vadd.s32 128, %v3961_v34 }
 0x274   :  { %v304_v38 = vsel %vm300_vm3, %v3961_v34, 128  ;;  %v337_v43 = vshra.s32 %v306_v37, 16  ;;  %v336_v60 = vand.u32 65535, %v306_v37 }
 0x275   :  { %v299_v39 = vpop.xlane.xlu1 %298  ;;  %v309_v40 = vshra.s32 %v304_v38, 16  ;;  %v308_v56 = vand.u32 65535, %v304_v38 }
 0x276   :  { %vm303_vm4 = vcmp.le.f32.partialorder %v291_v31, %v299_v39  ;;  %v295_v41 = vpop.xlane.xlu0 %294  ;;  %v339_v47 = vcvt.s32.f32 %v337_v43  ;;  %v338_v1 = vcvt.s32.f32 %v336_v60  ;;  %v2878_v60 = vld [vmem:[%s3826_s3 + $0x1] ss:$0 sm:$0xff]  ;;  %s4755_s3 = sld [smem:[#allocation14_spill]] }
 0x277   :  { %vm301_vm5 = vcmp.le.f32.partialorder %v289_v32, %v295_v41  ;;  %v311_v42 = vcvt.s32.f32 %v309_v40  ;;  %v307_v44 = vsel %vm303_vm4, %v3961_v34, 128  ;;  %v310_v59 = vcvt.s32.f32 %v308_v56 }
 0x278   :  { %v305_v45 = vsel %vm301_vm5, %v3961_v34, 128  ;;  %v351_v49 = vshra.s32 %v307_v44, 16  ;;  %v350_v2 = vand.u32 65535, %v307_v44  ;;  %v3776_v40 = vmov 1.0|1.0  }
 0x279   :  { %312 = vmin.xlane.f32.xlu0 %v311_v42  ;;  %v323_v46 = vshra.s32 %v305_v45, 16  ;;  %v322_v57 = vand.u32 65535, %v305_v45 }
 0x27a   :  { %v353_v50 = vcvt.s32.f32 %v351_v49  ;;  %v352_v6 = vcvt.s32.f32 %v350_v2 }
 0x27b   :  { %v325_v48 = vcvt.s32.f32 %v323_v46  ;;  %v324_v0 = vcvt.s32.f32 %v322_v57  ;;  %v3537_v46 = vld [vmem:[%s3821_s29 + $0x10] sm:$0xff]  }
 0x27c   :  { %3288 = vmatprep.subr.bf16.mxu1 %v3537_v46 }
 0x27d   :  { %340 = vmin.xlane.f32.xlu0 %v339_v47  ;;  %326 = vmin.xlane.f32.xlu1 %v325_v48 }
 0x27e   :  { %3289 = vmatpush3.bf16.msra.mxu1 %v3537_v46  ;;  %v3550_v46 = vld [vmem:[%s3831_s8 + $0x28] sm:$0xff]  }
 0x281   :  { %354 = vmin.xlane.f32.xlu1 %v353_v50 }
 0x306   :  { %v313_v58 = vpop.xlane.xlu0 %312 }
 0x307   :  { %vm314_vm6 = vcmp.eq.f32.partialorder %v311_v42, %v313_v58  ;;  %v319_v11 = vcvt.f32.s32 %v313_v58 }
 0x308   :  { %v315_v61 = vsel %vm314_vm6, %v310_v59, inf }
 0x309   :  { %316 = vmin.xlane.f32.xlu0 %v315_v61  ;;  %v320_v18 = vshll.u32 %v319_v11, 16  ;;  %v3546_v11 = vld [vmem:[%s3831_s8 + $0x18] sm:$0xff]  }
 0x30a   :  { %v327_v62 = vpop.xlane.xlu1 %326  ;;  %v341_v63 = vpop.xlane.xlu0 %340 }
 0x30b   :  { %vm328_vm7 = vcmp.eq.f32.partialorder %v325_v48, %v327_v62  ;;  %vm342_vm8 = vcmp.eq.f32.partialorder %v339_v47, %v341_v63  ;;  %v333_v12 = vcvt.f32.s32 %v327_v62  ;;  %v347_v19 = vcvt.f32.s32 %v341_v63  ;;  %v3538_v47 = vld [vmem:[%s3821_s29 + $0x18] sm:$0xff]   ;;  %s4754_s29 = sld [smem:[#allocation16_spill]] }
 0x30c   :  { %v329_v3 = vsel %vm328_vm7, %v324_v0, inf  ;;  %v343_v4 = vsel %vm342_vm8, %v338_v1, inf  ;;  %3290 = vmatprep.subr.bf16.mxu1 %v3538_v47 }
 0x30d   :  { %330 = vmin.xlane.f32.xlu1 %v329_v3  ;;  %344 = vmin.xlane.f32.xlu0 %v343_v4  ;;  %v334_v22 = vshll.u32 %v333_v12, 16  ;;  %v348_v25 = vshll.u32 %v347_v19, 16  ;;  %v3777_v3 = vmov 0   ;;  %v3539_v4 = vld [vmem:[%s3831_s8 + $0x40] sm:$0xff]  }
 0x30e   :  { %v355_v5 = vpop.xlane.xlu1 %354  ;;  %3291 = vmatpush3.bf16.msra.mxu1 %v3538_v47  ;;  %3525 = vset.pattern.permute.xlu1 %v3777_v3  ;;  %v3547_v12 = vld [vmem:[%s3831_s8 + $0x60] sm:$0xff]   ;;  %v659_v47 = vld [vmem:[%s3791_s5 + $0x8] sm:$0xff] }
 0x30f   :  { %vm356_vm9 = vcmp.eq.f32.partialorder %v353_v50, %v355_v5  ;;  %v361_v26 = vcvt.f32.s32 %v355_v5  ;;  %3524 = vset.pattern.permute.xlu0 %v3777_v3  ;;  %v3540_v5 = vld [vmem:[%s3831_s8] sm:$0xff]   ;;  %3098 = vmatprep.subr.bf16.mxu1 %v3539_v4 }
 0x310   :  { %v357_v7 = vsel %vm356_vm9, %v352_v6, inf  ;;  %v3541_v6 = vld [vmem:[%s3831_s8 + $0x48] sm:$0xff]  }
 0x311   :  { %358 = vmin.xlane.f32.xlu1 %v357_v7  ;;  %v362_v35 = vshll.u32 %v361_v26, 16  ;;  %v3542_v7 = vld [vmem:[%s3831_s8 + $0x8] sm:$0xff]  }
 0x396   :  { %v317_v14 = vpop.xlane.xlu0 %316 }
 0x397   :  { %v318_v20 = vcvt.f32.s32 %v317_v14 }
 0x399   :  { %v321_v21 = vadd.s32 %v320_v18, %v318_v20 }
 0x39a   :  { %v331_v23 = vpop.xlane.xlu1 %330  ;;  %v345_v24 = vpop.xlane.xlu0 %344 }
 0x39b   :  { %v332_v27 = vcvt.f32.s32 %v331_v23  ;;  %v346_v28 = vcvt.f32.s32 %v345_v24  ;;  %v3975_v29 = vadd.s32 128, %v321_v21  ;;  %vm364_vm10 = vcmp.eq.s32.totalorder %v3961_v34, %v321_v21 }
 0x39d   :  { %v335_v31 = vadd.s32 %v334_v22, %v332_v27  ;;  %v349_v32 = vadd.s32 %v348_v25, %v346_v28  ;;  %vm4727_vm12 = vcmp.eq.s32.totalorder %v3975_v29, %v3978_v30  ;;  %vm742_vm2 = vcmp.eq.s32.totalorder %v3975_v29, %v3961_v34 }
 0x39e   :  { %v359_v33 = vpop.xlane.xlu1 %358 }
 0x39f   :  { %v3980_v36 = vadd.s32 128, %v335_v31  ;;  %v360_v37 = vcvt.f32.s32 %v359_v33  ;;  %vm365_vm11 = vcmp.eq.s32.totalorder %v3961_v34, %v335_v31  ;;  %v3986_v38 = vadd.s32 128, %v349_v32 }
 0x3a0   :  { %vm2865_vm13 = vmpackc.low %vm365_vm11, %vm364_vm10  ;;  %vm366_vm3 = vcmp.eq.s32.totalorder %v3961_v34, %v349_v32 }
 0x3a1   :  { %v363_v39 = vadd.s32 %v362_v35, %v360_v37  ;;  %vm4726_vm14 = vcmp.eq.s32.totalorder %v3980_v36, %v3978_v30  ;;  %vm744_vm15 = vcmp.eq.s32.totalorder %v3980_v36, %v3961_v34  ;;  %3284 = vmatprep.mubr.msk.bf16.mxu0 %vm2865_vm13, %v3776_v40  ;;  %vm4725_vm7 = vcmp.eq.s32.totalorder %v3986_v38, %v3978_v30  ;;  %v3548_v37 = vld [vmem:[%s3831_s8 + $0x20] sm:$0xff]  }
 0x3a2   :  { %vm3999_vm0 = vmpackc.low %vm4726_vm14, %vm4727_vm12  ;;  %vm746_vm11 = vcmp.eq.s32.totalorder %v3986_v38, %v3961_v34 }
 0x3a3   :  { %vm367_vm4 = vcmp.eq.s32.totalorder %v3961_v34, %v363_v39  ;;  %v4007_v42 = vadd.s32 128, %v363_v39  ;;  %vm4009_vm5 = vmpackc.low %vm744_vm15, %vm742_vm2  ;;  %v3549_v39 = vld [vmem:[%s3831_s8 + $0x68] sm:$0xff]  }
 0x3a4   :  { %vm2867_vm6 = vmpackc.low %vm367_vm4, %vm366_vm3 }
 0x3a5   :  { %3285 = vmatmul.mubr.msk.bf16.vlgmr.msra.gmra.mrb[4].mxu0 %vm2867_vm6, %v3776_v40  ;;  %vm4724_vm8 = vcmp.eq.s32.totalorder %v4007_v42, %v3978_v30  ;;  %vm748_vm9 = vcmp.eq.s32.totalorder %v4007_v42, %v3961_v34 }
 0x3a6   :  { %vm4026_vm10 = vmpackc.low %vm4724_vm8, %vm4725_vm7 }
 0x3a7   :  { %vm4032_vm13 = vmpackc.low %vm748_vm9, %vm746_vm11 }
 0x478   :  { %v3286_v48 = vpop.f32.mrb[4].mxu0 }
 0x479   :  { %v476_v49 = vpop.f32.mrb[5].mxu0  ;;  %v493_v51 = vsub.f32 %v3952_v17, %v3286_v48  ;;  %v3551_v48 = vld [vmem:[%s3831_s8 + $0x70] sm:$0xff]  }
 0x47a   :  { %v3287_v50 = vpop.f32.mrb[6].mxu0  ;;  %v491_v54 = vsub.f32 %v3948_v15, %v476_v49  ;;  %v3552_v49 = vld [vmem:[%s3831_s8 + $0x30] sm:$0xff]  }
 0x47b   :  { %v494_v52 = vsub.f32 %v3946_v13, %v3287_v50  ;;  %v479_v53 = vpop.f32.mrb[7].mxu0  ;;  %v658_v50 = vld [vmem:[%s3791_s5] sm:$0xff] }
 0x47c   :  { %v492_v55 = vsub.f32 %v3950_v16, %v479_v53  ;;  %v3554_v53 = vld [vmem:[%s3831_s8 + $0x38] sm:$0xff]  }
 0x47d   :  { %v498_v56 = vpack.c.bf16 %v494_v52, %v493_v51  ;;  %v660_v51 = vld [vmem:[%s3791_s5 + $0x10] sm:$0xff]  ;;  %v3553_v52 = vld [vmem:[%s3831_s8 + $0x78] sm:$0xff]   ;;  %s4756_s8 = sld [smem:[#allocation15_spill]] }
 0x47e   :  { %v497_v57 = vpack.c.bf16 %v492_v55, %v491_v54  ;;  %v661_v54 = vld [vmem:[%s3791_s5 + $0x18] sm:$0xff]  ;;  %v662_v55 = vld [vmem:[%s3791_s5 + $0x20] sm:$0xff] }
 0x480   :  { %3292 = vmatprep.mubr.msk.bf16.mxu1 %vm222_vm1, %v497_v57  ;;  %v664_v57 = vld [vmem:[%s3791_s5 + $0x30] sm:$0xff] }
 0x481   :  { %3293 = vmatmul.mubr.msk.bf16.vlgmr.msra.gmra.mrb[4].mxu1 %vm222_vm1, %v498_v56  ;;  %v663_v56 = vld [vmem:[%s3791_s5 + $0x28] sm:$0xff] }
 0x482   :  { %3099 = vmatpush3.bf16.msra.mxu1 %v3540_v5 }
 0x483   :  { %3100 = vmatprep.subr.bf16.mxu1 %v3541_v6 }
 0x486   :  { %3101 = vmatpush3.bf16.msra.mxu1 %v3542_v7 }
 0x487   :  { %3102 = vmatprep.subr.bf16.mxu1 %v3543_v8 }
 0x48a   :  { %3103 = vmatpush3.bf16.msra.mxu1 %v3544_v9 }
 0x48b   :  { %3104 = vmatprep.subr.bf16.mxu1 %v3545_v10 }
 0x48e   :  { %3105 = vmatpush3.bf16.msra.mxu1 %v3546_v11 }
 0x48f   :  { %3106 = vmatprep.subr.bf16.mxu1 %v3547_v12 }
 0x492   :  { %3107 = vmatpush3.bf16.msra.mxu1 %v3548_v37 }
 0x493   :  { %3108 = vmatprep.subr.bf16.mxu1 %v3549_v39 }
 0x496   :  { %3109 = vmatpush3.bf16.msra.mxu1 %v3550_v46 }
 0x497   :  { %3110 = vmatprep.subr.bf16.mxu1 %v3551_v48 }
 0x49a   :  { %3111 = vmatpush3.bf16.msra.mxu1 %v3552_v49 }
 0x49b   :  { %3112 = vmatprep.subr.bf16.mxu1 %v3553_v52 }
 0x49e   :  { %3113 = vmatpush3.bf16.msra.mxu1 %v3554_v53 }
 0x554   :  { %v3294_v58 = vpop.f32.mrb[4].mxu1 }
 0x555   :  { %v556_v59 = vpop.f32.mrb[5].mxu1  ;;  %v573_v13 = vmul.f32 2.0, %v3294_v58  ;;  %v665_v58 = vld [vmem:[%s3791_s5 + $0x38] sm:$0xff]  ;;  %s4749_s5 = sld [smem:[#allocation10_spill]] }
 0x556   :  { %v571_v61 = vmul.f32 2.0, %v556_v59  ;;  %v3295_v62 = vpop.f32.mrb[6].mxu1 }
 0x557   :  { %v559_v17 = vpop.f32.mrb[7].mxu1  ;;  %v574_v0 = vmul.f32 2.0, %v3295_v62  ;;  %v583_v1 = vsub.f32 %v2878_v60, %v573_v13 }
 0x558   :  { %v572_v63 = vmul.f32 2.0, %v559_v17  ;;  %v581_v15 = vsub.f32 %v2878_v60, %v571_v61 }
 0x559   :  { %v584_v2 = vsub.f32 %v2878_v60, %v574_v0 }
 0x55a   :  { %585 = vmin.xlane.f32.xlu0 %v581_v15  ;;  %v582_v16 = vsub.f32 %v2878_v60, %v572_v63 }
 0x55c   :  { %587 = vmin.xlane.f32.xlu1 %v582_v16 }
 0x55e   :  { %589 = vmin.xlane.f32.xlu0 %v583_v1 }
 0x560   :  { %591 = vmin.xlane.f32.xlu1 %v584_v2 }
 0x5e7   :  { %v586_v14 = vpop.xlane.xlu0 %585 }
 0x5e8   :  { %vm593_vm1 = vcmp.le.f32.partialorder %v581_v15, %v586_v14 }
 0x5e9   :  { %v588_v18 = vpop.xlane.xlu1 %587  ;;  %v597_v20 = vsel %vm593_vm1, %v3961_v34, 128 }
 0x5ea   :  { %vm594_vm15 = vcmp.le.f32.partialorder %v582_v16, %v588_v18  ;;  %v602_v28 = vshra.s32 %v597_v20, 16  ;;  %v601_v59 = vand.u32 65535, %v597_v20 }
 0x5eb   :  { %v590_v19 = vpop.xlane.xlu0 %589  ;;  %v598_v24 = vsel %vm594_vm15, %v3961_v34, 128 }
 0x5ec   :  { %vm595_vm2 = vcmp.le.f32.partialorder %v583_v1, %v590_v19  ;;  %v616_v32 = vshra.s32 %v598_v24, 16  ;;  %v604_v33 = vcvt.s32.f32 %v602_v28  ;;  %v615_v61 = vand.u32 65535, %v598_v24 }
 0x5ed   :  { %v4056_v21 = vsel %vm595_vm2, %v3961_v34, 128  ;;  %v592_v22 = vpop.xlane.xlu1 %591  ;;  %v603_v63 = vcvt.s32.f32 %v601_v59 }
 0x5ee   :  { %vm596_vm3 = vcmp.le.f32.partialorder %v584_v2, %v592_v22  ;;  %v630_v23 = vshra.s32 %v4056_v21, 16  ;;  %v618_v35 = vcvt.s32.f32 %v616_v32  ;;  %v629_v15 = vand.u32 65535, %v4056_v21 }
 0x5ef   :  { %v600_v25 = vsel %vm596_vm3, %v3961_v34, 128  ;;  %v617_v1 = vcvt.s32.f32 %v615_v61  ;;  %v844_v61 = vld [vmem:[%s3836_s14 + $0x10] sm:$0xff] }
 0x5f0   :  { %v4061_v26 = vcvt.s32.f32 %v630_v23  ;;  %v644_v27 = vshra.s32 %v600_v25, 16  ;;  %v643_v17 = vand.u32 65535, %v600_v25  ;;  %v631_v6 = vcvt.s32.f32 %v629_v15 }
 0x5f2   :  { %633 = vmin.xlane.f32.xlu0 %v4061_v26  ;;  %v646_v31 = vcvt.s32.f32 %v644_v27  ;;  %v645_v3 = vcvt.s32.f32 %v643_v17 }
 0x5f4   :  { %647 = vmin.xlane.f32.xlu1 %v646_v31 }
 0x5f6   :  { %605 = vmin.xlane.f32.xlu0 %v604_v33 }
 0x5f8   :  { %619 = vmin.xlane.f32.xlu1 %v618_v35 }
 0x609   :  { %670 = vperm.xlu1 %3525, %v659_v47  }
 0x60c   :  { %667 = vperm.xlu0 %3524, %v658_v50  }
 0x60d   :  { %673 = vperm.xlu1 %3525, %v660_v51   ;;  %v842_v51 = vld [vmem:[%s3836_s14] sm:$0xff] }
 0x611   :  { %676 = vperm.xlu1 %3525, %v661_v54  }
 0x615   :  { %679 = vperm.xlu1 %3525, %v662_v55   ;;  %v843_v55 = vld [vmem:[%s3836_s14 + $0x8] sm:$0xff] }
 0x619   :  { %682 = vperm.xlu1 %3525, %v663_v56  }
 0x61d   :  { %685 = vperm.xlu1 %3525, %v664_v57  }
 0x621   :  { %688 = vperm.xlu1 %3525, %v665_v58  }
 0x67f   :  { %v4079_v60 = vpop.xlane.xlu0 %633 }
 0x680   :  { %vm635_vm11 = vcmp.eq.f32.partialorder %v4061_v26, %v4079_v60  ;;  %v640_v43 = vcvt.f32.s32 %v4079_v60 }
 0x681   :  { %v4081_v62 = vpop.xlane.xlu1 %647  ;;  %v636_v8 = vsel %vm635_vm11, %v631_v6, inf }
 0x682   :  { %vm649_vm9 = vcmp.eq.f32.partialorder %v646_v31, %v4081_v62  ;;  %v654_v41 = vcvt.f32.s32 %v4081_v62 }
 0x683   :  { %v4083_v13 = vpop.xlane.xlu0 %605  ;;  %v650_v4 = vsel %vm649_vm9, %v645_v3, inf  ;;  %v846_v3 = vld [vmem:[%s3836_s14 + $0x20] sm:$0xff] }
 0x684   :  { %vm607_vm4 = vcmp.eq.f32.partialorder %v604_v33, %v4083_v13  ;;  %v612_v19 = vcvt.f32.s32 %v4083_v13  ;;  %v655_v28 = vshll.u32 %v654_v41, 16  ;;  %v845_v13 = vld [vmem:[%s3836_s14 + $0x18] sm:$0xff] }
 0x685   :  { %v4087_v0 = vpop.xlane.xlu1 %619  ;;  %v608_v16 = vsel %vm607_vm4, %v603_v63, inf  ;;  %v849_v41 = vld [vmem:[%s3836_s14 + $0x38] sm:$0xff] }
 0x686   :  { %609 = vmin.xlane.f32.xlu1 %v608_v16  ;;  %vm621_vm6 = vcmp.eq.f32.partialorder %v618_v35, %v4087_v0  ;;  %v626_v20 = vcvt.f32.s32 %v4087_v0  ;;  %v613_v22 = vshll.u32 %v612_v19, 16  ;;  %v641_v35 = vshll.u32 %v640_v43, 16 }
 0x687   :  { %v622_v2 = vsel %vm621_vm6, %v617_v1, inf }
 0x688   :  { %623 = vmin.xlane.f32.xlu0 %v622_v2  ;;  %v627_v25 = vshll.u32 %v626_v20, 16 }
 0x689   :  { %v671_v5 = vpop.permute.xlu1 %670 }
 0x68a   :  { %651 = vmin.xlane.f32.xlu1 %v650_v4  ;;  %vm693_vm1 = vcmp.eq.s32.totalorder %v671_v5, %v3978_v30  ;;  %vm692_vm15 = vcmp.eq.s32.totalorder %v671_v5, %v3961_v34 }
 0x68b   :  { %v668_v7 = vpop.permute.xlu0 %667 }
 0x68c   :  { %vm690_vm2 = vcmp.eq.s32.totalorder %v668_v7, %v3961_v34  ;;  %vm691_vm3 = vcmp.eq.s32.totalorder %v668_v7, %v3978_v30  ;;  %637 = vmin.xlane.f32.xlu0 %v636_v8  ;;  %v847_v7 = vld [vmem:[%s3836_s14 + $0x28] sm:$0xff] }
 0x68d   :  { %vm2927_vm4 = vmpackc.low %vm693_vm1, %vm691_vm3  ;;  %v674_v9 = vpop.permute.xlu1 %673 }
 0x68e   :  { %vm2929_vm6 = vmpackc.low %vm692_vm15, %vm690_vm2  ;;  %2928 = vmatprep.mubr.msk.bf16.mxu1 %vm2927_vm4, %v3776_v40  ;;  %vm695_vm9 = vcmp.eq.s32.totalorder %v674_v9, %v3978_v30  ;;  %vm694_vm8 = vcmp.eq.s32.totalorder %v674_v9, %v3961_v34 }
 0x68f   :  { %2930 = vmatmul.mubr.msk.bf16.vlgmr.msra.gmra.mrb[8].mxu1 %vm2929_vm6, %v3776_v40 }
 0x691   :  { %v677_v10 = vpop.permute.xlu1 %676 }
 0x692   :  { %vm696_vm7 = vcmp.eq.s32.totalorder %v677_v10, %v3961_v34  ;;  %vm697_vm11 = vcmp.eq.s32.totalorder %v677_v10, %v3978_v30 }
 0x693   :  { %vm2931_vm14 = vmpackc.low %vm697_vm11, %vm695_vm9 }
 0x694   :  { %vm2933_vm12 = vmpackc.low %vm696_vm7, %vm694_vm8  ;;  %2932 = vmatprep.mubr.msk.bf16.mxu1 %vm2931_vm14, %v3776_v40 }
 0x695   :  { %v680_v11 = vpop.permute.xlu1 %679 }
 0x696   :  { %vm699_vm1 = vcmp.eq.s32.totalorder %v680_v11, %v3978_v30  ;;  %vm698_vm15 = vcmp.eq.s32.totalorder %v680_v11, %v3961_v34 }
 0x697   :  { %2934 = vmatmul.mubr.msk.bf16.gmra.mrb[12].mxu1 %vm2933_vm12, %v3776_v40 }
 0x699   :  { %v683_v12 = vpop.permute.xlu1 %682 }
 0x69a   :  { %vm700_vm2 = vcmp.eq.s32.totalorder %v683_v12, %v3961_v34  ;;  %vm701_vm3 = vcmp.eq.s32.totalorder %v683_v12, %v3978_v30 }
 0x69b   :  { %vm2935_vm4 = vmpackc.low %vm701_vm3, %vm699_vm1 }
 0x69c   :  { %vm2937_vm6 = vmpackc.low %vm700_vm2, %vm698_vm15  ;;  %2936 = vmatprep.mubr.msk.bf16.mxu1 %vm2935_vm4, %v3776_v40 }
 0x69d   :  { %v686_v14 = vpop.permute.xlu1 %685 }
 0x69e   :  { %vm703_vm14 = vcmp.eq.s32.totalorder %v686_v14, %v3978_v30  ;;  %vm702_vm12 = vcmp.eq.s32.totalorder %v686_v14, %v3961_v34 }
 0x69f   :  { %2938 = vmatmul.mubr.msk.bf16.gmra.mrb[16].mxu1 %vm2937_vm6, %v3776_v40 }
 0x6a1   :  { %v689_v18 = vpop.permute.xlu1 %688 }
 0x6a2   :  { %vm704_vm7 = vcmp.eq.s32.totalorder %v689_v18, %v3961_v34  ;;  %vm705_vm8 = vcmp.eq.s32.totalorder %v689_v18, %v3978_v30  ;;  %v848_v18 = vld [vmem:[%s3836_s14 + $0x30] sm:$0xff] }
 0x6a3   :  { %vm2939_vm9 = vmpackc.low %vm705_vm8, %vm703_vm14  ;;  %vm4760_vm8 = vcmp.eq.s32.totalorder %v3975_v29, %v3978_v30 }
 0x6a4   :  { %vm2941_vm11 = vmpackc.low %vm704_vm7, %vm702_vm12  ;;  %2940 = vmatprep.mubr.msk.bf16.mxu1 %vm2939_vm9, %v3776_v40  ;;  %vm1053_vm7 = vcmask 523264   ;;  %vm4761_vm9 = vcmp.eq.s32.totalorder %v3980_v36, %v3978_v30 }
 0x6a7   :  { %2942 = vmatmul.mubr.msk.bf16.gmra.mrb[20].mxu1 %vm2941_vm11, %v3776_v40  ;;  %vm4762_vm11 = vcmp.eq.s32.totalorder %v3986_v38, %v3978_v30 }
 0x6a8   :  { %2944 = vmatprep.mubr.msk.bf16.mxu1 %vm3999_vm0, %v3776_v40 }
 0x6af   :  { %2946 = vmatmul.mubr.msk.bf16.gmra.mrb[24].mxu1 %vm4009_vm5, %v3776_v40 }
 0x6b0   :  { %2948 = vmatprep.mubr.msk.bf16.mxu1 %vm4026_vm10, %v3776_v40 }
 0x6b7   :  { %2950 = vmatmul.mubr.msk.bf16.gmra.mrb[28].mxu1 %vm4032_vm13, %v3776_v40 }
 0x713   :  { %v610_v21 = vpop.xlane.xlu1 %609 }
 0x714   :  { %v611_v23 = vcvt.f32.s32 %v610_v21 }
 0x715   :  { %v624_v24 = vpop.xlane.xlu0 %623 }
 0x716   :  { %v614_v26 = vadd.s32 %v613_v22, %v611_v23  ;;  %v625_v44 = vcvt.f32.s32 %v624_v24 }
 0x717   :  { %v652_v27 = vpop.xlane.xlu1 %651 }
 0x718   :  { %v4133_v31 = vadd.s32 128, %v614_v26  ;;  %v628_v45 = vadd.s32 %v627_v25, %v625_v44  ;;  %v653_v32 = vcvt.f32.s32 %v652_v27  ;;  %v850_v44 = vld [vmem:[%s3836_s14 + $0x40] sm:$0xff] }
 0x719   :  { %v638_v33 = vpop.xlane.xlu0 %637 }
 0x71a   :  { %v4135_v37 = vadd.s32 128, %v628_v45  ;;  %v656_v39 = vadd.s32 %v655_v28, %v653_v32  ;;  %v639_v46 = vcvt.f32.s32 %v638_v33  ;;  %vm771_vm0 = vcmp.eq.s32.totalorder %v4133_v31, %v3978_v30  ;;  %v851_v32 = vld [vmem:[%s3836_s14 + $0x48] sm:$0xff] }
 0x71b   :  { %vm770_vm1 = vcmp.eq.s32.totalorder %v4133_v31, %v3961_v34 }
 0x71c   :  { %v4139_v47 = vadd.s32 128, %v656_v39  ;;  %v642_v48 = vadd.s32 %v641_v35, %v639_v46  ;;  %vm773_vm5 = vcmp.eq.s32.totalorder %v4135_v37, %v3978_v30  ;;  %vm772_vm10 = vcmp.eq.s32.totalorder %v4135_v37, %v3961_v34 }
 0x71d   :  { %vm2951_vm13 = vmpackc.low %vm773_vm5, %vm771_vm0 }
 0x71e   :  { %v4153_v49 = vadd.s32 128, %v642_v48  ;;  %2952 = vmatprep.mubr.msk.bf16.mxu1 %vm2951_vm13, %v3776_v40  ;;  %vm2953_vm15 = vmpackc.low %vm772_vm10, %vm770_vm1  ;;  %vm777_vm3 = vcmp.eq.s32.totalorder %v4139_v47, %v3978_v30  ;;  %vm776_vm14 = vcmp.eq.s32.totalorder %v4139_v47, %v3961_v34  ;;  %vm4763_vm10 = vcmp.eq.s32.totalorder %v4007_v42, %v3978_v30 }
 0x71f   :  { %2954 = vmatmul.mubr.msk.bf16.gmra.mrb[32].mxu1 %vm2953_vm15, %v3776_v40 }
 0x720   :  { %vm775_vm2 = vcmp.eq.s32.totalorder %v4153_v49, %v3978_v30  ;;  %vm774_vm4 = vcmp.eq.s32.totalorder %v4153_v49, %v3961_v34 }
 0x721   :  { %vm2955_vm6 = vmpackc.low %vm777_vm3, %vm775_vm2 }
 0x722   :  { %2956 = vmatprep.mubr.msk.bf16.mxu1 %vm2955_vm6, %v3776_v40  ;;  %vm2957_vm12 = vmpackc.low %vm776_vm14, %vm774_vm4 }
 0x727   :  { %2958 = vmatmul.mubr.msk.bf16.gmra.mrb[36].mxu1 %vm2957_vm12, %v3776_v40 }
 0x762   :  { %v3114_v50 = vpop.f32.mrb[8].mxu1 }
 0x763   :  { %v3115_v52 = vpop.f32.mrb[9].mxu1 }
 0x764   :  { %v3116_v53 = vadd.f32 %v3115_v52, %v3114_v50  ;;  %v3117_v54 = vpop.f32.mrb[10].mxu1  ;;  %v852_v52 = vld [vmem:[%s3836_s14 + $0x50] sm:$0xff] }
 0x765   :  { %v3118_v56 = vpop.f32.mrb[11].mxu1 }
 0x766   :  { %v989_v57 = vadd.f32 %v3116_v53, %v842_v51  ;;  %v3119_v58 = vadd.f32 %v3118_v56, %v3117_v54  ;;  %v853_v56 = vld [vmem:[%s3836_s14 + $0x58] sm:$0xff] }
 0x768   :  { %v992_v59 = vadd.f32 %v3119_v58, %v843_v55 }
 0x76a   :  { %v4175_v60 = vpack.c.bf16 %v992_v59, %v989_v57  ;;  %v3120_v34 = vpop.f32.mrb[12].mxu1 }
 0x76b   :  { %v3121_v62 = vpop.f32.mrb[13].mxu1 }
 0x76c   :  { %v3122_v17 = vadd.f32 %v3121_v62, %v3120_v34  ;;  %v3123_v40 = vpop.f32.mrb[14].mxu1 }
 0x76d   :  { %v3124_v63 = vpop.f32.mrb[15].mxu1 }
 0x76e   :  { %v997_v15 = vadd.f32 %v3122_v17, %v844_v61  ;;  %v3125_v0 = vadd.f32 %v3124_v63, %v3123_v40  ;;  %v854_v40 = vld [vmem:[%s3836_s14 + $0x60] sm:$0xff] }
 0x770   :  { %v1000_v16 = vadd.f32 %v3125_v0, %v845_v13  ;;  %v855_v0 = vld [vmem:[%s3836_s14 + $0x68] sm:$0xff] }
 0x772   :  { %v4179_v1 = vpack.c.bf16 %v1000_v16, %v997_v15  ;;  %v3126_v2 = vpop.f32.mrb[16].mxu1 }
 0x773   :  { %v3127_v4 = vpop.f32.mrb[17].mxu1 }
 0x774   :  { %v3128_v5 = vadd.f32 %v3127_v4, %v3126_v2  ;;  %v3129_v6 = vpop.f32.mrb[18].mxu1 }
 0x775   :  { %v3130_v8 = vpop.f32.mrb[19].mxu1 }
 0x776   :  { %v1005_v9 = vadd.f32 %v3128_v5, %v846_v3  ;;  %v3131_v10 = vadd.f32 %v3130_v8, %v3129_v6  ;;  %v856_v8 = vld [vmem:[%s3836_s14 + $0x70] sm:$0xff] }
 0x778   :  { %v1008_v11 = vadd.f32 %v3131_v10, %v847_v7 }
 0x77a   :  { %v4183_v12 = vpack.c.bf16 %v1008_v11, %v1005_v9  ;;  %v3132_v14 = vpop.f32.mrb[20].mxu1 }
 0x77b   :  { %v3133_v19 = vpop.f32.mrb[21].mxu1 }
 0x77c   :  { %v3134_v20 = vadd.f32 %v3133_v19, %v3132_v14  ;;  %v3135_v21 = vpop.f32.mrb[22].mxu1  ;;  %v857_v14 = vld [vmem:[%s3836_s14 + $0x78] sm:$0xff]  ;;  %s4757_s14 = sld [smem:[#allocation18_spill]] }
 0x77d   :  { %v3136_v22 = vpop.f32.mrb[23].mxu1 }
 0x77e   :  { %v1013_v23 = vadd.f32 %v3134_v20, %v848_v18  ;;  %v3137_v24 = vadd.f32 %v3136_v22, %v3135_v21 }
 0x780   :  { %v1016_v43 = vadd.f32 %v3137_v24, %v849_v41 }
 0x782   :  { %v4187_v25 = vpack.c.bf16 %v1016_v43, %v1013_v23  ;;  %v3138_v26 = vpop.f32.mrb[24].mxu1 }
 0x783   :  { %v3139_v27 = vpop.f32.mrb[25].mxu1 }
 0x784   :  { %v3140_v28 = vadd.f32 %v3139_v27, %v3138_v26  ;;  %v3141_v45 = vpop.f32.mrb[26].mxu1 }
 0x785   :  { %v3142_v33 = vpop.f32.mrb[27].mxu1 }
 0x786   :  { %v4191_v35 = vadd.f32 %v3140_v28, %v850_v44  ;;  %v3143_v39 = vadd.f32 %v3142_v33, %v3141_v45 }
 0x788   :  { %v4193_v46 = vadd.f32 %v3143_v39, %v851_v32  ;;  %v1054_v48 = vsel %vm1053_vm7, %v4191_v35, 0.0 }
 0x789   :  { %1055 = vadd.xlane.f32.xlu0 %v1054_v48 }
 0x78a   :  { %v3144_v50 = vpop.f32.mrb[28].mxu1  ;;  %v1057_v51 = vsel %vm1053_vm7, %v4193_v46, 0.0 }
 0x78b   :  { %v3145_v53 = vpop.f32.mrb[29].mxu1  ;;  %1058 = vadd.xlane.f32.xlu1 %v1057_v51 }
 0x78c   :  { %v3146_v54 = vadd.f32 %v3145_v53, %v3144_v50  ;;  %v3147_v55 = vpop.f32.mrb[30].mxu1 }
 0x78d   :  { %v3148_v57 = vpop.f32.mrb[31].mxu1 }
 0x78e   :  { %v4201_v58 = vadd.f32 %v3146_v54, %v852_v52  ;;  %v3149_v59 = vadd.f32 %v3148_v57, %v3147_v55 }
 0x790   :  { %v4203_v34 = vadd.f32 %v3149_v59, %v853_v56  ;;  %v1060_v61 = vsel %vm1053_vm7, %v4201_v58, 0.0  ;;  %v3555_v59 = vld [vmem:[%s3851_s30] sm:$0xff]  }
 0x791   :  { %1061 = vadd.xlane.f32.xlu0 %v1060_v61  ;;  %3296 = vmatprep.subr.bf16.mxu0 %v3555_v59  ;;  %v3556_v61 = vld [vmem:[%s3851_s30 + $0x8] sm:$0xff]  }
 0x792   :  { %v1063_v62 = vsel %vm1053_vm7, %v4203_v34, 0.0  ;;  %3297 = vmatpush3.bf16.msra.mxu0 %v3555_v59 }
 0x793   :  { %1064 = vadd.xlane.f32.xlu1 %v1063_v62  ;;  %3298 = vmatprep.subr.bf16.mxu0 %v3556_v61  ;;  %v3557_v62 = vld [vmem:[%s3851_s30 + $0x10] sm:$0xff]  }
 0x796   :  { %3299 = vmatpush3.bf16.msra.mxu0 %v3556_v61 }
 0x797   :  { %3300 = vmatprep.subr.bf16.mxu0 %v3557_v62 }
 0x79a   :  { %3301 = vmatpush3.bf16.msra.mxu0 %v3557_v62 }
 0x7f2   :  { %v3150_v17 = vpop.f32.mrb[32].mxu1 }
 0x7f3   :  { %v3151_v13 = vpop.f32.mrb[33].mxu1 }
 0x7f4   :  { %v3152_v63 = vadd.f32 %v3151_v13, %v3150_v17  ;;  %v3153_v15 = vpop.f32.mrb[34].mxu1  ;;  %v3558_v17 = vld [vmem:[%s3851_s30 + $0x18] sm:$0xff]  }
 0x7f5   :  { %v3154_v16 = vpop.f32.mrb[35].mxu1  ;;  %3302 = vmatprep.subr.bf16.mxu0 %v3558_v17 }
 0x7f6   :  { %v4211_v2 = vadd.f32 %v3152_v63, %v854_v40  ;;  %v3155_v3 = vadd.f32 %v3154_v16, %v3153_v15  ;;  %3303 = vmatpush3.bf16.msra.mxu0 %v3558_v17 }
 0x7f8   :  { %v4213_v4 = vadd.f32 %v3155_v3, %v855_v0  ;;  %v1066_v5 = vsel %vm1053_vm7, %v4211_v2, 0.0 }
 0x7f9   :  { %1067 = vadd.xlane.f32.xlu0 %v1066_v5 }
 0x7fa   :  { %v3156_v6 = vpop.f32.mrb[36].mxu1  ;;  %v1069_v7 = vsel %vm1053_vm7, %v4213_v4, 0.0 }
 0x7fb   :  { %1070 = vadd.xlane.f32.xlu1 %v1069_v7  ;;  %v3157_v9 = vpop.f32.mrb[37].mxu1 }
 0x7fc   :  { %v3158_v10 = vadd.f32 %v3157_v9, %v3156_v6  ;;  %v3159_v11 = vpop.f32.mrb[38].mxu1 }
 0x7fd   :  { %v3160_v18 = vpop.f32.mrb[39].mxu1 }
 0x7fe   :  { %v4221_v19 = vadd.f32 %v3158_v10, %v856_v8  ;;  %v3161_v20 = vadd.f32 %v3160_v18, %v3159_v11 }
 0x800   :  { %v4223_v21 = vadd.f32 %v3161_v20, %v857_v14  ;;  %v1072_v41 = vsel %vm1053_vm7, %v4221_v19, 0.0 }
 0x801   :  { %1073 = vadd.xlane.f32.xlu0 %v1072_v41 }
 0x802   :  { %v1075_v22 = vsel %vm1053_vm7, %v4223_v21, 0.0 }
 0x803   :  { %1076 = vadd.xlane.f32.xlu1 %v1075_v22 }
 0x816   :  { %v1056_v23 = vpop.xlane.xlu0 %1055 }
 0x817   :  { %v1079_v24 = vmul.f32 0.015625, %v1056_v23 }
 0x818   :  { %v1059_v43 = vpop.xlane.xlu1 %1058 }
 0x819   :  { %v4230_v26 = vsub.f32 %v4191_v35, %v1079_v24  ;;  %v1080_v44 = vmul.f32 0.015625, %v1059_v43 }
 0x81b   :  { %v4233_v27 = vsub.f32 %v4193_v46, %v1080_v44  ;;  %v1095_v28 = vmul.f32 %v4230_v26, %v4230_v26 }
 0x81d   :  { %v1103_v45 = vsel %vm1053_vm7, %v1095_v28, 0.0  ;;  %v1096_v32 = vmul.f32 %v4233_v27, %v4233_v27 }
 0x81e   :  { %v1062_v33 = vpop.xlane.xlu0 %1061  ;;  %1104 = vadd.xlane.f32.xlu0 %v1103_v45 }
 0x81f   :  { %v1081_v39 = vmul.f32 0.015625, %v1062_v33  ;;  %v1106_v48 = vsel %vm1053_vm7, %v1096_v32, 0.0 }
 0x820   :  { %1107 = vadd.xlane.f32.xlu1 %v1106_v48  ;;  %v1065_v50 = vpop.xlane.xlu1 %1064  ;;  %v3559_v48 = vld [vmem:[%s3861_s12] sm:$0xff]  }
 0x821   :  { %v4242_v51 = vsub.f32 %v4201_v58, %v1081_v39  ;;  %v1082_v52 = vmul.f32 0.015625, %v1065_v50  ;;  %3312 = vmatprep.subr.bf16.mxu0 %v3559_v48 }
 0x823   :  { %v4245_v53 = vsub.f32 %v4203_v34, %v1082_v52  ;;  %v1097_v54 = vmul.f32 %v4242_v51, %v4242_v51 }
 0x825   :  { %v1109_v55 = vsel %vm1053_vm7, %v1097_v54, 0.0  ;;  %v1098_v56 = vmul.f32 %v4245_v53, %v4245_v53 }
 0x826   :  { %1110 = vadd.xlane.f32.xlu0 %v1109_v55 }
 0x827   :  { %v1112_v57 = vsel %vm1053_vm7, %v1098_v56, 0.0 }
 0x828   :  { %1113 = vadd.xlane.f32.xlu1 %v1112_v57  ;;  %v4283_v57 = vld [vmem:[%s3841_s19] ss:$0 sm:$0xff]  ;;  %s4758_s19 = sld [smem:[#allocation17_spill]] }
 0x886   :  { %v1068_v40 = vpop.xlane.xlu0 %1067 }
 0x887   :  { %v1083_v13 = vmul.f32 0.015625, %v1068_v40  ;;  %v2960_v40 = vld [vmem:[%s3846_s24] ss:$0 sm:$0xff]  ;;  %s4759_s24 = sld [smem:[#allocation19_spill]] }
 0x888   :  { %v1071_v63 = vpop.xlane.xlu1 %1070 }
 0x889   :  { %v4258_v15 = vsub.f32 %v4211_v2, %v1083_v13  ;;  %v1084_v0 = vmul.f32 0.015625, %v1071_v63 }
 0x88b   :  { %v4261_v16 = vsub.f32 %v4213_v4, %v1084_v0  ;;  %v1099_v3 = vmul.f32 %v4258_v15, %v4258_v15 }
 0x88d   :  { %v1115_v5 = vsel %vm1053_vm7, %v1099_v3, 0.0  ;;  %v1100_v6 = vmul.f32 %v4261_v16, %v4261_v16 }
 0x88e   :  { %1116 = vadd.xlane.f32.xlu0 %v1115_v5  ;;  %v1074_v7 = vpop.xlane.xlu0 %1073 }
 0x88f   :  { %v1085_v8 = vmul.f32 0.015625, %v1074_v7  ;;  %v1118_v9 = vsel %vm1053_vm7, %v1100_v6, 0.0 }
 0x890   :  { %1119 = vadd.xlane.f32.xlu1 %v1118_v9  ;;  %v1077_v10 = vpop.xlane.xlu1 %1076 }
 0x891   :  { %v4270_v11 = vsub.f32 %v4221_v19, %v1085_v8  ;;  %v1086_v14 = vmul.f32 0.015625, %v1077_v10 }
 0x893   :  { %v4273_v18 = vsub.f32 %v4223_v21, %v1086_v14  ;;  %v1101_v20 = vmul.f32 %v4270_v11, %v4270_v11 }
 0x895   :  { %v1121_v41 = vsel %vm1053_vm7, %v1101_v20, 0.0  ;;  %v1102_v22 = vmul.f32 %v4273_v18, %v4273_v18  ;;  %v3560_v20 = vld [vmem:[%s3861_s12 + $0x8] sm:$0xff]  }
 0x896   :  { %1122 = vadd.xlane.f32.xlu0 %v1121_v41  ;;  %v3563_v41 = vld [vmem:[%s3871_s27] sm:$0xff]  }
 0x897   :  { %v1124_v23 = vsel %vm1053_vm7, %v1102_v22, 0.0 }
 0x898   :  { %1125 = vadd.xlane.f32.xlu1 %v1124_v23 }
 0x8ab   :  { %v1105_v24 = vpop.xlane.xlu0 %1104 }
 0x8ac   :  { %v1127_v43 = vmul.f32 0.015625, %v1105_v24 }
 0x8ad   :  { %v1108_v44 = vpop.xlane.xlu1 %1107 }
 0x8ae   :  { %v1135_v28 = vadd.f32 1e-05, %v1127_v43  ;;  %v1128_v45 = vmul.f32 0.015625, %v1108_v44 }
 0x8b0   :  { %3587 = vrsqrt.f32 %v1135_v28  ;;  %v1136_v32 = vadd.f32 1e-05, %v1128_v45 }
 0x8b2   :  { %3589 = vrsqrt.f32 %v1136_v32 }
 0x8b3   :  { %v1111_v33 = vpop.xlane.xlu0 %1110 }
 0x8b4   :  { %v1129_v39 = vmul.f32 0.015625, %v1111_v33 }
 0x8b5   :  { %v1114_v50 = vpop.xlane.xlu1 %1113 }
 0x8b6   :  { %v1137_v52 = vadd.f32 1e-05, %v1129_v39  ;;  %v1130_v54 = vmul.f32 0.015625, %v1114_v50 }
 0x8b8   :  { %3591 = vrsqrt.f32 %v1137_v52  ;;  %v1138_v55 = vadd.f32 1e-05, %v1130_v54 }
 0x8ba   :  { %v3588_v56 = vpop.eup %3587  ;;  %3593 = vrsqrt.f32 %v1138_v55 }
 0x8bb   :  { %v1151_v59 = vmul.f32 %v3588_v56, %v4230_v26 }
 0x8bc   :  { %v3590_v61 = vpop.eup %3589 }
 0x8bd   :  { %v1152_v62 = vmul.f32 %v3590_v61, %v4233_v27  ;;  %v1165_v17 = vmul.f32 %v4283_v57, %v1151_v59 }
 0x8bf   :  { %v1166_v13 = vmul.f32 %v4283_v57, %v1152_v62  ;;  %v1179_v63 = vadd.f32 %v2960_v40, %v1165_v17 }
 0x8c1   :  { %v1180_v0 = vadd.f32 %v2960_v40, %v1166_v13 }
 0x8c2   :  { %v3592_v3 = vpop.eup %3591 }
 0x8c3   :  { %v1153_v5 = vmul.f32 %v3592_v3, %v4242_v51  ;;  %v4291_v6 = vpack.c.bf16 %v1180_v0, %v1179_v63  ;;  %v3561_v51 = vld [vmem:[%s3861_s12 + $0x10] sm:$0xff]  }
 0x8c4   :  { %v3594_v7 = vpop.eup %3593 }
 0x8c5   :  { %v1167_v26 = vmul.f32 %v4283_v57, %v1153_v5  ;;  %v1154_v27 = vmul.f32 %v3594_v7, %v4245_v53  ;;  %3304 = vmatprep.mubr.msk.bf16.mxu0 %vm1053_vm7, %v4291_v6  ;;  %v3562_v53 = vld [vmem:[%s3861_s12 + $0x18] sm:$0xff]  }
 0x8c7   :  { %v1168_v8 = vmul.f32 %v4283_v57, %v1154_v27  ;;  %v1181_v9 = vadd.f32 %v2960_v40, %v1167_v26 }
 0x8c9   :  { %v1182_v10 = vadd.f32 %v2960_v40, %v1168_v8 }
 0x8cb   :  { %v4298_v14 = vpack.c.bf16 %v1182_v10, %v1181_v9 }
 0x8cd   :  { %3305 = vmatmul.mubr.msk.bf16.vlgmr.msra.gmra.mrb[8].mxu0 %vm1053_vm7, %v4298_v14 }
 0x8ce   :  { %3313 = vmatpush3.bf16.msra.mxu0 %v3559_v48 }
 0x8cf   :  { %3314 = vmatprep.subr.bf16.mxu0 %v3560_v20 }
 0x8d2   :  { %3315 = vmatpush3.bf16.msra.mxu0 %v3560_v20 }
 0x8d3   :  { %3316 = vmatprep.subr.bf16.mxu0 %v3561_v51 }
 0x8d6   :  { %3317 = vmatpush3.bf16.msra.mxu0 %v3561_v51 }
 0x8d7   :  { %3318 = vmatprep.subr.bf16.mxu0 %v3562_v53 }
 0x8da   :  { %3319 = vmatpush3.bf16.msra.mxu0 %v3562_v53 }
 0x8db   :  { %3336 = vmatprep.subr.bf16.mxu0 %v3563_v41 }
 0x91b   :  { %v1117_v22 = vpop.xlane.xlu0 %1116 }
 0x91c   :  { %v1131_v23 = vmul.f32 0.015625, %v1117_v22 }
 0x91d   :  { %v1120_v24 = vpop.xlane.xlu1 %1119 }
 0x91e   :  { %v1139_v43 = vadd.f32 1e-05, %v1131_v23  ;;  %v1132_v44 = vmul.f32 0.015625, %v1120_v24 }
 0x920   :  { %3595 = vrsqrt.f32 %v1139_v43  ;;  %v1140_v28 = vadd.f32 1e-05, %v1132_v44 }
 0x922   :  { %3597 = vrsqrt.f32 %v1140_v28 }
 0x923   :  { %v1123_v45 = vpop.xlane.xlu0 %1122 }
 0x924   :  { %v1133_v32 = vmul.f32 0.015625, %v1123_v45 }
 0x925   :  { %v1126_v33 = vpop.xlane.xlu1 %1125 }
 0x926   :  { %v1141_v39 = vadd.f32 1e-05, %v1133_v32  ;;  %v1134_v48 = vmul.f32 0.015625, %v1126_v33  ;;  %v2970_v33 = vld [vmem:[%s4749_s5] ss:$0 sm:$0xff] }
 0x928   :  { %3599 = vrsqrt.f32 %v1141_v39  ;;  %v1142_v50 = vadd.f32 1e-05, %v1134_v48 }
 0x92a   :  { %v3596_v52 = vpop.eup %3595  ;;  %3601 = vrsqrt.f32 %v1142_v50 }
 0x92b   :  { %v1155_v54 = vmul.f32 %v3596_v52, %v4258_v15 }
 0x92c   :  { %v3598_v55 = vpop.eup %3597 }
 0x92d   :  { %v1156_v56 = vmul.f32 %v3598_v55, %v4261_v16  ;;  %v1169_v59 = vmul.f32 %v4283_v57, %v1155_v54 }
 0x92f   :  { %v1170_v61 = vmul.f32 %v4283_v57, %v1156_v56  ;;  %v1183_v62 = vadd.f32 %v2960_v40, %v1169_v59 }
 0x931   :  { %v1184_v17 = vadd.f32 %v2960_v40, %v1170_v61 }
 0x932   :  { %v3600_v13 = vpop.eup %3599 }
 0x933   :  { %v1157_v63 = vmul.f32 %v3600_v13, %v4270_v11  ;;  %v1189_v0 = vpack.c.bf16 %v1184_v17, %v1183_v62  ;;  %v3564_v11 = vld [vmem:[%s3871_s27 + $0x8] sm:$0xff]  }
 0x934   :  { %v3602_v3 = vpop.eup %3601 }
 0x935   :  { %v1158_v5 = vmul.f32 %v3602_v3, %v4273_v18  ;;  %3308 = vmatprep.mubr.msk.bf16.mxu0 %vm1053_vm7, %v1189_v0  ;;  %v1171_v15 = vmul.f32 %v4283_v57, %v1157_v63  ;;  %v3565_v18 = vld [vmem:[%s3871_s27 + $0x10] sm:$0xff]  }
 0x937   :  { %v1172_v16 = vmul.f32 %v4283_v57, %v1158_v5  ;;  %v1185_v7 = vadd.f32 %v2960_v40, %v1171_v15  ;;  %v3566_v57 = vld [vmem:[%s3871_s27 + $0x18] sm:$0xff]  }
 0x939   :  { %v1186_v26 = vadd.f32 %v2960_v40, %v1172_v16  ;;  %v2961_v40 = vld [vmem:[%s4748_s0] ss:$0 sm:$0xff] }
 0x93b   :  { %v1190_v27 = vpack.c.bf16 %v1186_v26, %v1185_v7 }
 0x93d   :  { %3309 = vmatmul.mubr.msk.bf16.gmra.mrb[12].mxu0 %vm1053_vm7, %v1190_v27 }
 0x93e   :  { %3320 = vmatprep.mubr.msk.bf16.mxu0 %vm1053_vm7, %v4175_v60 }
 0x945   :  { %3321 = vmatmul.mubr.msk.bf16.vlgmr.msra.gmra.mrb[16].mxu0 %vm1053_vm7, %v4179_v1 }
 0x946   :  { %3324 = vmatprep.mubr.msk.bf16.mxu0 %vm1053_vm7, %v4183_v12  ;;  %3337 = vmatpush3.bf16.msra.mxu0 %v3563_v41 }
 0x947   :  { %3338 = vmatprep.subr.bf16.mxu0 %v3564_v11 }
 0x94a   :  { %3339 = vmatpush3.bf16.msra.mxu0 %v3564_v11 }
 0x94b   :  { %3340 = vmatprep.subr.bf16.mxu0 %v3565_v18 }
 0x94d   :  { %3325 = vmatmul.mubr.msk.bf16.gmra.mrb[20].mxu0 %vm1053_vm7, %v4187_v25 }
 0x94e   :  { %3328 = vmatprep.mubr.msk.bf16.mxu0 %vm1053_vm7, %v4291_v6  ;;  %3341 = vmatpush3.bf16.msra.mxu0 %v3565_v18 }
 0x94f   :  { %3342 = vmatprep.subr.bf16.mxu0 %v3566_v57 }
 0x952   :  { %3343 = vmatpush3.bf16.msra.mxu0 %v3566_v57 }
 0x955   :  { %3329 = vmatmul.mubr.msk.bf16.gmra.mrb[24].mxu0 %vm1053_vm7, %v4298_v14 }
 0x956   :  { %3332 = vmatprep.mubr.msk.bf16.mxu0 %vm1053_vm7, %v1189_v0 }
 0x95d   :  { %3333 = vmatmul.mubr.msk.bf16.gmra.mrb[28].mxu0 %vm1053_vm7, %v1190_v27 }
 0x95e   :  { %3344 = vmatprep.mubr.msk.bf16.mxu0 %vm1053_vm7, %v4175_v60 }
 0x965   :  { %3345 = vmatmul.mubr.msk.bf16.vlgmr.msra.gmra.mrb[32].mxu0 %vm1053_vm7, %v4179_v1 }
 0x966   :  { %3348 = vmatprep.mubr.msk.bf16.mxu0 %vm1053_vm7, %v4183_v12 }
 0x96d   :  { %3349 = vmatmul.mubr.msk.bf16.gmra.mrb[36].mxu0 %vm1053_vm7, %v4187_v25 }
 0x96e   :  { %3352 = vmatprep.mubr.msk.bf16.mxu0 %vm1053_vm7, %v4291_v6 }
 0x975   :  { %3353 = vmatmul.mubr.msk.bf16.gmra.mrb[40].mxu0 %vm1053_vm7, %v4298_v14 }
 0x976   :  { %3356 = vmatprep.mubr.msk.bf16.mxu0 %vm1053_vm7, %v1189_v0 }
 0x97d   :  { %3357 = vmatmul.mubr.msk.bf16.gmra.mrb[44].mxu0 %vm1053_vm7, %v1190_v27 }
 0x9a0   :  { %v3306_v60 = vpop.f32.mrb[8].mxu0 }
 0x9a1   :  { %v1280_v8 = vpop.f32.mrb[9].mxu0  ;;  %v4348_v9 = vadd.f32 %v3306_v60, %v2961_v40 }
 0x9a2   :  { %v3307_v1 = vpop.f32.mrb[10].mxu0  ;;  %v1281_v25 = vadd.f32 %v2961_v40, %v1280_v8 }
 0x9a3   :  { %v4350_v12 = vadd.f32 %v3307_v1, %v2961_v40  ;;  %v1283_v10 = vpop.f32.mrb[11].mxu0 }
 0x9a4   :  { %v1284_v20 = vadd.f32 %v2961_v40, %v1283_v10 }
 0x9a5   :  { %v1312_v6 = vpack.c.bf16 %v4350_v12, %v4348_v9  ;;  %v1725_v12 = vld [vmem:[%s4751_s17 + $0x8] sm:$0xff] }
 0x9a6   :  { %v1311_v14 = vpack.c.bf16 %v1284_v20, %v1281_v25 }
 0x9a8   :  { %3376 = vmatprep.mubr.msk.bf16.mxu1 %vm1053_vm7, %v1311_v14 }
 0xa10   :  { %v3310_v51 = vpop.f32.mrb[12].mxu0 }
 0xa11   :  { %v1296_v53 = vpop.f32.mrb[13].mxu0  ;;  %v4355_v22 = vadd.f32 %v3310_v51, %v2961_v40 }
 0xa12   :  { %v3311_v41 = vpop.f32.mrb[14].mxu0  ;;  %v4359_v43 = vadd.f32 %v2961_v40, %v1296_v53 }
 0xa13   :  { %v4357_v23 = vadd.f32 %v3311_v41, %v2961_v40  ;;  %v1299_v24 = vpop.f32.mrb[15].mxu0 }
 0xa14   :  { %v4361_v44 = vadd.f32 %v2961_v40, %v1299_v24 }
 0xa15   :  { %v1314_v28 = vpack.c.bf16 %v4357_v23, %v4355_v22  ;;  %v1727_v22 = vld [vmem:[%s4751_s17 + $0x18] sm:$0xff] }
 0xa16   :  { %v1313_v45 = vpack.c.bf16 %v4361_v44, %v4359_v43  ;;  %v1726_v43 = vld [vmem:[%s4751_s17 + $0x10] sm:$0xff] }
 0xa18   :  { %v3322_v32 = vpop.f32.mrb[16].mxu0 }
 0xa19   :  { %v1400_v39 = vpop.f32.mrb[17].mxu0  ;;  %v1409_v50 = vadd.f32 %v3322_v32, %v2970_v33 }
 0xa1a   :  { %v3323_v48 = vpop.f32.mrb[18].mxu0  ;;  %v1401_v55 = vadd.f32 %v2970_v33, %v1400_v39 }
 0xa1b   :  { %v1412_v52 = vadd.f32 %v3323_v48, %v2970_v33  ;;  %v1403_v54 = vpop.f32.mrb[19].mxu0 }
 0xa1c   :  { %v1404_v56 = vadd.f32 %v2970_v33, %v1403_v54 }
 0xa1d   :  { %v1464_v59 = vpack.c.bf16 %v1412_v52, %v1409_v50 }
 0xa1e   :  { %v1463_v61 = vpack.c.bf16 %v1404_v56, %v1401_v55  ;;  %v2983_v56 = vld [vmem:[%s4750_s9] ss:$0 sm:$0xff] }
 0xa1f   :  { %v1631_v11 = vsel %vm1053_vm7, %v1464_v59, 0 }
 0xa20   :  { %v3326_v62 = vpop.f32.mrb[20].mxu0  ;;  %3480 = vmatprep.subr.msk.bf16.mxu1 %vm1053_vm7, %v1463_v61  ;;  %v1628_v17 = vsel %vm1053_vm7, %v1463_v61, 0 }
 0xa21   :  { %v1416_v13 = vpop.f32.mrb[21].mxu0  ;;  %3361 = vmatpush3.bf16.xpose.msra.mxu1 %v1628_v17  ;;  %v1425_v0 = vadd.f32 %v3326_v62, %v2970_v33 }
 0xa22   :  { %v3327_v63 = vpop.f32.mrb[22].mxu0  ;;  %3481 = vmatprep.subr.msk.bf16.mxu1 %vm1053_vm7, %v1464_v59  ;;  %v1417_v15 = vadd.f32 %v2970_v33, %v1416_v13 }
 0xa23   :  { %v1428_v3 = vadd.f32 %v3327_v63, %v2970_v33  ;;  %v1419_v5 = vpop.f32.mrb[23].mxu0 }
 0xa24   :  { %v1420_v16 = vadd.f32 %v2970_v33, %v1419_v5 }
 0xa25   :  { %v1466_v7 = vpack.c.bf16 %v1428_v3, %v1425_v0 }
 0xa26   :  { %v1465_v26 = vpack.c.bf16 %v1420_v16, %v1417_v15 }
 0xa27   :  { %v1637_v59 = vsel %vm1053_vm7, %v1466_v7, 0 }
 0xa28   :  { %v3330_v27 = vpop.f32.mrb[24].mxu0  ;;  %v1634_v51 = vsel %vm1053_vm7, %v1465_v26, 0 }
 0xa29   :  { %v1432_v18 = vpop.f32.mrb[25].mxu0  ;;  %3363 = vmatpush3.bf16.xpose.msra.mxu1 %v1631_v11  ;;  %v1441_v60 = vadd.f32 %v3330_v27, %v2970_v33 }
 0xa2a   :  { %v3331_v57 = vpop.f32.mrb[26].mxu0  ;;  %3482 = vmatprep.subr.msk.bf16.mxu1 %vm1053_vm7, %v1465_v26  ;;  %v1433_v1 = vadd.f32 %v2970_v33, %v1432_v18 }
 0xa2b   :  { %v1444_v40 = vadd.f32 %v3331_v57, %v2970_v33  ;;  %v1435_v8 = vpop.f32.mrb[27].mxu0 }
 0xa2c   :  { %v1436_v10 = vadd.f32 %v2970_v33, %v1435_v8 }
 0xa2d   :  { %v1468_v25 = vpack.c.bf16 %v1444_v40, %v1441_v60 }
 0xa2e   :  { %v1467_v20 = vpack.c.bf16 %v1436_v10, %v1433_v1 }
 0xa2f   :  { %v1643_v10 = vsel %vm1053_vm7, %v1468_v25, 0 }
 0xa30   :  { %v3334_v14 = vpop.f32.mrb[28].mxu0  ;;  %v1640_v16 = vsel %vm1053_vm7, %v1467_v20, 0 }
 0xa31   :  { %v1448_v53 = vpop.f32.mrb[29].mxu0  ;;  %3365 = vmatpush3.bf16.xpose.msra.mxu1 %v1634_v51  ;;  %v1457_v24 = vadd.f32 %v3334_v14, %v2970_v33 }
 0xa32   :  { %v3335_v41 = vpop.f32.mrb[30].mxu0  ;;  %3483 = vmatprep.subr.msk.bf16.mxu1 %vm1053_vm7, %v1466_v7  ;;  %v1449_v48 = vadd.f32 %v2970_v33, %v1448_v53 }
 0xa33   :  { %v1460_v32 = vadd.f32 %v3335_v41, %v2970_v33  ;;  %v1451_v39 = vpop.f32.mrb[31].mxu0 }
 0xa34   :  { %v1452_v50 = vadd.f32 %v2970_v33, %v1451_v39 }
 0xa35   :  { %v4375_v52 = vpack.c.bf16 %v1460_v32, %v1457_v24 }
 0xa36   :  { %v1469_v54 = vpack.c.bf16 %v1452_v50, %v1449_v48 }
 0xa38   :  { %v3346_v55 = vpop.f32.mrb[32].mxu0 }
 0xa39   :  { %v1544_v61 = vpop.f32.mrb[33].mxu0  ;;  %3367 = vmatpush3.bf16.xpose.msra.mxu1 %v1637_v59  ;;  %v1553_v17 = vadd.f32 %v3346_v55, %v2983_v56  ;;  %v1646_v55 = vsel %vm1053_vm7, %v1469_v54, 0 }
 0xa3a   :  { %v3347_v62 = vpop.f32.mrb[34].mxu0  ;;  %3484 = vmatprep.subr.msk.bf16.mxu1 %vm1053_vm7, %v1467_v20  ;;  %v1545_v0 = vadd.f32 %v2983_v56, %v1544_v61 }
 0xa3b   :  { %v1556_v13 = vadd.f32 %v3347_v62, %v2983_v56  ;;  %v1547_v63 = vpop.f32.mrb[35].mxu0 }
 0xa3c   :  { %v1548_v3 = vadd.f32 %v2983_v56, %v1547_v63 }
 0xa3d   :  { %v1608_v5 = vpack.c.bf16 %v1556_v13, %v1553_v17 }
 0xa3e   :  { %v1607_v15 = vpack.c.bf16 %v1548_v3, %v1545_v0 }
 0xa40   :  { %v3350_v33 = vpop.f32.mrb[36].mxu0  ;;  %3384 = vmatprep.subr.bf16.mxu0 %v1607_v15 }
 0xa41   :  { %v1560_v26 = vpop.f32.mrb[37].mxu0  ;;  %3369 = vmatpush3.bf16.xpose.msra.mxu1 %v1640_v16  ;;  %3385 = vmatpush3.bf16.msra.mxu0 %v1607_v15  ;;  %v1569_v27 = vadd.f32 %v3350_v33, %v2983_v56 }
 0xa42   :  { %v3351_v7 = vpop.f32.mrb[38].mxu0  ;;  %3485 = vmatprep.subr.msk.bf16.mxu1 %vm1053_vm7, %v1468_v25  ;;  %3386 = vmatprep.subr.bf16.mxu0 %v1608_v5  ;;  %v1561_v57 = vadd.f32 %v2983_v56, %v1560_v26 }
 0xa43   :  { %v1572_v11 = vadd.f32 %v3351_v7, %v2983_v56  ;;  %v1563_v18 = vpop.f32.mrb[39].mxu0 }
 0xa44   :  { %v1564_v60 = vadd.f32 %v2983_v56, %v1563_v18 }
 0xa45   :  { %v1610_v40 = vpack.c.bf16 %v1572_v11, %v1569_v27  ;;  %3387 = vmatpush3.bf16.msra.mxu0 %v1608_v5  ;;  %v1724_v5 = vld [vmem:[%s4751_s17] sm:$0xff] }
 0xa46   :  { %v1609_v8 = vpack.c.bf16 %v1564_v60, %v1561_v57  ;;  %v1728_v27 = vld [vmem:[%s4751_s17 + $0x20] sm:$0xff] }
 0xa48   :  { %v3354_v1 = vpop.f32.mrb[40].mxu0  ;;  %3388 = vmatprep.subr.bf16.mxu0 %v1609_v8 }
 0xa49   :  { %v1576_v20 = vpop.f32.mrb[41].mxu0  ;;  %3371 = vmatpush3.bf16.xpose.msra.mxu1 %v1643_v10  ;;  %3389 = vmatpush3.bf16.msra.mxu0 %v1609_v8  ;;  %v1585_v51 = vadd.f32 %v3354_v1, %v2983_v56 }
 0xa4a   :  { %v3355_v14 = vpop.f32.mrb[42].mxu0  ;;  %3486 = vmatprep.subr.msk.bf16.mxu1 %vm1053_vm7, %v1469_v54  ;;  %3390 = vmatprep.subr.bf16.mxu0 %v1610_v40  ;;  %v1577_v24 = vadd.f32 %v2983_v56, %v1576_v20  ;;  %v1649_v54 = vsel %vm1053_vm7, %v4375_v52, 0  ;;  %v1730_v20 = vld [vmem:[%s4751_s17 + $0x30] sm:$0xff] }
 0xa4b   :  { %v1588_v53 = vadd.f32 %v3355_v14, %v2983_v56  ;;  %v1579_v41 = vpop.f32.mrb[43].mxu0 }
 0xa4c   :  { %v1580_v32 = vadd.f32 %v2983_v56, %v1579_v41 }
 0xa4d   :  { %v1612_v39 = vpack.c.bf16 %v1588_v53, %v1585_v51  ;;  %3391 = vmatpush3.bf16.msra.mxu0 %v1610_v40  ;;  %v1729_v40 = vld [vmem:[%s4751_s17 + $0x28] sm:$0xff]  ;;  %v1731_v53 = vld [vmem:[%s4751_s17 + $0x38] sm:$0xff] }
 0xa4e   :  { %v1611_v48 = vpack.c.bf16 %v1580_v32, %v1577_v24 }
 0xa50   :  { %v3358_v50 = vpop.f32.mrb[44].mxu0  ;;  %3392 = vmatprep.subr.bf16.mxu0 %v1611_v48 }
 0xa51   :  { %v1592_v25 = vpop.f32.mrb[45].mxu0  ;;  %3373 = vmatpush3.bf16.xpose.msra.mxu1 %v1646_v55  ;;  %3393 = vmatpush3.bf16.msra.mxu0 %v1611_v48  ;;  %v1601_v61 = vadd.f32 %v3358_v50, %v2983_v56 }
 0xa52   :  { %v3359_v59 = vpop.f32.mrb[46].mxu0  ;;  %3487 = vmatprep.subr.msk.bf16.mxu1 %vm1053_vm7, %v4375_v52  ;;  %3394 = vmatprep.subr.bf16.mxu0 %v1612_v39  ;;  %v1593_v13 = vadd.f32 %v2983_v56, %v1592_v25 }
 0xa53   :  { %v1604_v62 = vadd.f32 %v3359_v59, %v2983_v56  ;;  %v1595_v17 = vpop.f32.mrb[47].mxu0 }
 0xa54   :  { %v1596_v63 = vadd.f32 %v2983_v56, %v1595_v17 }
 0xa55   :  { %v1614_v0 = vpack.c.bf16 %v1604_v62, %v1601_v61  ;;  %3395 = vmatpush3.bf16.msra.mxu0 %v1612_v39 }
 0xa56   :  { %v1613_v3 = vpack.c.bf16 %v1596_v63, %v1593_v13 }
 0xa58   :  { %3396 = vmatprep.subr.bf16.mxu0 %v1613_v3 }
 0xa59   :  { %3375 = vmatpush3.bf16.xpose.msra.mxu1 %v1649_v54  ;;  %3397 = vmatpush3.bf16.msra.mxu0 %v1613_v3 }
 0xa5a   :  { %3398 = vmatprep.subr.bf16.mxu0 %v1614_v0 }
 0xa5d   :  { %3399 = vmatpush3.bf16.msra.mxu0 %v1614_v0 }
 0xa60   :  { %3377 = vmatmul.mubr.msk.bf16.vlgmr.msra.gmra.mrb[40].mxu1 %vm1053_vm7, %v1312_v6 }
 0xa61   :  { %3380 = vmatprep.mubr.msk.bf16.mxu1 %vm1053_vm7, %v1313_v45 }
 0xa68   :  { %3381 = vmatmul.mubr.msk.bf16.gmra.mrb[44].mxu1 %vm1053_vm7, %v1314_v28 }
 0xb33   :  { %v3378_v52 = vpop.f32.mrb[40].mxu1 }
 0xb34   :  { %v1685_v56 = vpop.f32.mrb[41].mxu1  ;;  %v1718_v6 = vmul.f32 0.125, %v3378_v52 }
 0xb35   :  { %v1716_v15 = vmul.f32 0.125, %v1685_v56  ;;  %v3379_v33 = vpop.f32.mrb[42].mxu1 }
 0xb36   :  { %v1688_v9 = vpop.f32.mrb[43].mxu1  ;;  %v1719_v44 = vmul.f32 0.125, %v3379_v33  ;;  %v1734_v28 = vadd.f32 %v1726_v43, %v1718_v6 }
 0xb37   :  { %v1717_v16 = vmul.f32 0.125, %v1688_v9  ;;  %v1732_v26 = vadd.f32 %v1724_v5, %v1716_v15 }
 0xb38   :  { %v1735_v57 = vadd.f32 %v1727_v22, %v1719_v44 }
 0xb39   :  { %1740 = vmax.xlane.f32.xlu0 %v1732_v26  ;;  %v1733_v45 = vadd.f32 %v1725_v12, %v1717_v16 }
 0xb3b   :  { %1742 = vmax.xlane.f32.xlu1 %v1733_v45  ;;  %v3382_v23 = vpop.f32.mrb[44].mxu1 }
 0xb3c   :  { %v1701_v7 = vpop.f32.mrb[45].mxu1  ;;  %v1722_v8 = vmul.f32 0.125, %v3382_v23 }
 0xb3d   :  { %v1720_v11 = vmul.f32 0.125, %v1701_v7  ;;  %1744 = vmax.xlane.f32.xlu0 %v1734_v28  ;;  %v3383_v18 = vpop.f32.mrb[46].mxu1 }
 0xb3e   :  { %v1704_v60 = vpop.f32.mrb[47].mxu1  ;;  %v1723_v14 = vmul.f32 0.125, %v3383_v18  ;;  %v1738_v41 = vadd.f32 %v1730_v20, %v1722_v8  ;;  %v3569_v18 = vld [vmem:[%s4752_s21 + $0x10] sm:$0xff]  }
 0xb3f   :  { %v1721_v1 = vmul.f32 0.125, %v1704_v60  ;;  %1746 = vmax.xlane.f32.xlu1 %v1735_v57  ;;  %v1736_v10 = vadd.f32 %v1728_v27, %v1720_v11  ;;  %v3567_v27 = vld [vmem:[%s4752_s21] sm:$0xff]   ;;  %v3568_v11 = vld [vmem:[%s4752_s21 + $0x8] sm:$0xff]  }
 0xb40   :  { %v1739_v24 = vadd.f32 %v1731_v53, %v1723_v14  ;;  %3408 = vmatprep.subr.bf16.mxu1 %v3567_v27 }
 0xb41   :  { %1748 = vmax.xlane.f32.xlu0 %v1736_v10  ;;  %v1737_v51 = vadd.f32 %v1729_v40, %v1721_v1  ;;  %3409 = vmatpush3.bf16.msra.mxu1 %v3567_v27 }
 0xb42   :  { %3410 = vmatprep.subr.bf16.mxu1 %v3568_v11 }
 0xb43   :  { %1750 = vmax.xlane.f32.xlu1 %v1737_v51 }
 0xb45   :  { %1752 = vmax.xlane.f32.xlu0 %v1738_v41  ;;  %3411 = vmatpush3.bf16.msra.mxu1 %v3568_v11 }
 0xb46   :  { %3412 = vmatprep.subr.bf16.mxu1 %v3569_v18 }
 0xb47   :  { %1754 = vmax.xlane.f32.xlu1 %v1739_v24 }
 0xb49   :  { %3413 = vmatpush3.bf16.msra.mxu1 %v3569_v18 }
 0xbc6   :  { %v1741_v32 = vpop.xlane.xlu0 %1740 }
 0xbc7   :  { %v1756_v39 = vsub.f32 %v1732_v26, %v1741_v32 }
 0xbc8   :  { %v1743_v48 = vpop.xlane.xlu1 %1742 }
 0xbc9   :  { %v1764_v50 = vmul.f32 1.442695, %v1756_v39  ;;  %v1757_v55 = vsub.f32 %v1733_v45, %v1743_v48 }
 0xbca   :  { %v1745_v25 = vpop.xlane.xlu0 %1744 }
 0xbcb   :  { %3603 = vpow2.f32 %v1764_v50  ;;  %v1766_v59 = vmul.f32 1.442695, %v1757_v55  ;;  %v1758_v61 = vsub.f32 %v1734_v28, %v1745_v25 }
 0xbcc   :  { %v1747_v62 = vpop.xlane.xlu1 %1746 }
 0xbcd   :  { %3605 = vpow2.f32 %v1766_v59  ;;  %v1768_v17 = vmul.f32 1.442695, %v1758_v61  ;;  %v1759_v13 = vsub.f32 %v1735_v57, %v1747_v62 }
 0xbce   :  { %v1749_v63 = vpop.xlane.xlu0 %1748 }
 0xbcf   :  { %3607 = vpow2.f32 %v1768_v17  ;;  %v1770_v0 = vmul.f32 1.442695, %v1759_v13  ;;  %v1760_v3 = vsub.f32 %v1736_v10, %v1749_v63 }
 0xbd0   :  { %v1751_v54 = vpop.xlane.xlu1 %1750 }
 0xbd1   :  { %3609 = vpow2.f32 %v1770_v0  ;;  %v1772_v52 = vmul.f32 1.442695, %v1760_v3  ;;  %v1761_v56 = vsub.f32 %v1737_v51, %v1751_v54 }
 0xbd2   :  { %v1753_v5 = vpop.xlane.xlu0 %1752 }
 0xbd3   :  { %3611 = vpow2.f32 %v1772_v52  ;;  %v1774_v15 = vmul.f32 1.442695, %v1761_v56  ;;  %v1762_v33 = vsub.f32 %v1738_v41, %v1753_v5  ;;  %v3570_v56 = vld [vmem:[%s4752_s21 + $0x18] sm:$0xff]  }
 0xbd4   :  { %v1755_v9 = vpop.xlane.xlu1 %1754  ;;  %3414 = vmatprep.subr.bf16.mxu1 %v3570_v56 }
 0xbd5   :  { %v3604_v12 = vpop.eup %3603  ;;  %3613 = vpow2.f32 %v1774_v15  ;;  %v1776_v6 = vmul.f32 1.442695, %v1762_v33  ;;  %v1763_v16 = vsub.f32 %v1739_v24, %v1755_v9  ;;  %3415 = vmatpush3.bf16.msra.mxu1 %v3570_v56 }
 0xbd6   :  { %1780 = vadd.xlane.f32.xlu0 %v3604_v12 }
 0xbd7   :  { %v3606_v26 = vpop.eup %3605  ;;  %3615 = vpow2.f32 %v1776_v6  ;;  %v1778_v43 = vmul.f32 1.442695, %v1763_v16 }
 0xbd8   :  { %1782 = vadd.xlane.f32.xlu1 %v3606_v26 }
 0xbd9   :  { %v3608_v44 = vpop.eup %3607  ;;  %3617 = vpow2.f32 %v1778_v43 }
 0xbda   :  { %1784 = vadd.xlane.f32.xlu0 %v3608_v44 }
 0xbdb   :  { %v3610_v45 = vpop.eup %3609 }
 0xbdc   :  { %1786 = vadd.xlane.f32.xlu1 %v3610_v45 }
 0xbdd   :  { %v3612_v22 = vpop.eup %3611 }
 0xbde   :  { %1788 = vadd.xlane.f32.xlu0 %v3612_v22 }
 0xbdf   :  { %v3614_v23 = vpop.eup %3613 }
 0xbe0   :  { %1790 = vadd.xlane.f32.xlu1 %v3614_v23 }
 0xbe1   :  { %v3616_v28 = vpop.eup %3615 }
 0xbe2   :  { %1792 = vadd.xlane.f32.xlu0 %v3616_v28 }
 0xbe3   :  { %v3618_v7 = vpop.eup %3617 }
 0xbe4   :  { %1794 = vadd.xlane.f32.xlu1 %v3618_v7 }
 0xc63   :  { %v1781_v57 = vpop.xlane.xlu0 %1780 }
 0xc64   :  { %3619 = vrcp.f32 %v1781_v57 }
 0xc65   :  { %v1783_v60 = vpop.xlane.xlu1 %1782 }
 0xc66   :  { %3621 = vrcp.f32 %v1783_v60 }
 0xc67   :  { %v1785_v40 = vpop.xlane.xlu0 %1784 }
 0xc68   :  { %3623 = vrcp.f32 %v1785_v40 }
 0xc69   :  { %v1787_v8 = vpop.xlane.xlu1 %1786 }
 0xc6a   :  { %3625 = vrcp.f32 %v1787_v8 }
 0xc6b   :  { %v1789_v1 = vpop.xlane.xlu0 %1788 }
 0xc6c   :  { %3627 = vrcp.f32 %v1789_v1 }
 0xc6d   :  { %v1791_v10 = vpop.xlane.xlu1 %1790 }
 0xc6e   :  { %v3620_v20 = vpop.eup %3619  ;;  %3629 = vrcp.f32 %v1791_v10 }
 0xc6f   :  { %v1793_v14 = vpop.xlane.xlu0 %1792  ;;  %v1804_v41 = vmul.f32 %v3620_v20, %v3604_v12 }
 0xc70   :  { %v3622_v51 = vpop.eup %3621  ;;  %3631 = vrcp.f32 %v1793_v14 }
 0xc71   :  { %v1795_v53 = vpop.xlane.xlu1 %1794  ;;  %v1805_v24 = vmul.f32 %v3622_v51, %v3606_v26 }
 0xc72   :  { %v3624_v32 = vpop.eup %3623  ;;  %3633 = vrcp.f32 %v1795_v53 }
 0xc73   :  { %v1812_v39 = vpack.c.bf16 %v1805_v24, %v1804_v41  ;;  %v1806_v50 = vmul.f32 %v3624_v32, %v3608_v44 }
 0xc74   :  { %v3626_v48 = vpop.eup %3625 }
 0xc75   :  { %v1807_v55 = vmul.f32 %v3626_v48, %v3610_v45  ;;  %3400 = vmatprep.mubr.bf16.mxu0 %v1812_v39 }
 0xc76   :  { %v3628_v25 = vpop.eup %3627 }
 0xc77   :  { %v1813_v59 = vpack.c.bf16 %v1807_v55, %v1806_v50  ;;  %v1808_v62 = vmul.f32 %v3628_v25, %v3612_v22 }
 0xc78   :  { %v3630_v61 = vpop.eup %3629 }
 0xc79   :  { %3401 = vmatmul.mubr.bf16.vlgmr.msra.gmra.mrb[48].mxu0 %v1813_v59  ;;  %v1809_v17 = vmul.f32 %v3630_v61, %v3614_v23 }
 0xc7a   :  { %v3632_v13 = vpop.eup %3631 }
 0xc7b   :  { %v1814_v63 = vpack.c.bf16 %v1809_v17, %v1808_v62  ;;  %v1810_v3 = vmul.f32 %v3632_v13, %v3616_v28  ;;  %v3008_v28 = vld [vmem:[%s4753_s25] ss:$0 sm:$0xff] }
 0xc7c   :  { %v3634_v0 = vpop.eup %3633 }
 0xc7d   :  { %3404 = vmatprep.mubr.bf16.mxu0 %v1814_v63  ;;  %v1811_v54 = vmul.f32 %v3634_v0, %v3618_v7 }
 0xc7f   :  { %v1815_v52 = vpack.c.bf16 %v1811_v54, %v1810_v3 }
 0xc81   :  { %3405 = vmatmul.mubr.bf16.gmra.mrb[52].mxu0 %v1815_v52 }
 0xd4c   :  { %v3402_v5 = vpop.f32.mrb[48].mxu0 }
 0xd4d   :  { %v1850_v15 = vpop.f32.mrb[49].mxu0 }
 0xd4e   :  { %v3403_v33 = vpop.f32.mrb[50].mxu0 }
 0xd4f   :  { %v1882_v9 = vpack.c.bf16 %v3403_v33, %v3402_v5  ;;  %v1853_v12 = vpop.f32.mrb[51].mxu0 }
 0xd50   :  { %v1881_v6 = vpack.c.bf16 %v1853_v12, %v1850_v15 }
 0xd52   :  { %3416 = vmatprep.mubr.msk.bf16.mxu1 %vm1053_vm7, %v1881_v6 }
 0xd53   :  { %3417 = vmatmul.mubr.msk.bf16.vlgmr.msra.gmra.mrb[48].mxu1 %vm1053_vm7, %v1882_v9 }
 0xd54   :  { %v3406_v16 = vpop.f32.mrb[52].mxu0 }
 0xd55   :  { %v1866_v26 = vpop.f32.mrb[53].mxu0 }
 0xd56   :  { %v3407_v43 = vpop.f32.mrb[54].mxu0 }
 0xd57   :  { %v1884_v44 = vpack.c.bf16 %v3407_v43, %v3406_v16  ;;  %v1869_v45 = vpop.f32.mrb[55].mxu0 }
 0xd58   :  { %v1883_v22 = vpack.c.bf16 %v1869_v45, %v1866_v26 }
 0xd5a   :  { %3420 = vmatprep.mubr.msk.bf16.mxu1 %vm1053_vm7, %v1883_v22 }
 0xd5b   :  { %3421 = vmatmul.mubr.msk.bf16.gmra.mrb[52].mxu1 %vm1053_vm7, %v1884_v44 }
 0xe26   :  { %v3418_v23 = vpop.f32.mrb[48].mxu1 }
 0xe27   :  { %v1963_v7 = vpop.f32.mrb[49].mxu1  ;;  %v1996_v27 = vadd.f32 %v3418_v23, %v4201_v58 }
 0xe28   :  { %v1994_v11 = vadd.f32 %v1963_v7, %v4191_v35  ;;  %v3419_v18 = vpop.f32.mrb[50].mxu1 }
 0xe29   :  { %v1966_v57 = vpop.f32.mrb[51].mxu1  ;;  %v1997_v40 = vadd.f32 %v3419_v18, %v4203_v34  ;;  %v4424_v1 = vadd.f32 %v3008_v28, %v1996_v27 }
 0xe2a   :  { %v4420_v60 = vadd.f32 %v3008_v28, %v1994_v11  ;;  %v1995_v8 = vadd.f32 %v1966_v57, %v4193_v46 }
 0xe2b   :  { %v4430_v14 = vadd.f32 %v3008_v28, %v1997_v40  ;;  %v2025_v41 = vsel %vm1053_vm7, %v4424_v1, 0.0 }
 0xe2c   :  { %v4426_v10 = vadd.f32 %v3008_v28, %v1995_v8  ;;  %v2019_v20 = vsel %vm1053_vm7, %v4420_v60, 0.0 }
 0xe2d   :  { %2020 = vadd.xlane.f32.xlu0 %v2019_v20  ;;  %v2028_v50 = vsel %vm1053_vm7, %v4430_v14, 0.0 }
 0xe2e   :  { %v3422_v58 = vpop.f32.mrb[52].mxu1  ;;  %v2022_v35 = vsel %vm1053_vm7, %v4426_v10, 0.0 }
 0xe2f   :  { %2023 = vadd.xlane.f32.xlu1 %v2022_v35  ;;  %v1979_v51 = vpop.f32.mrb[53].mxu1  ;;  %v2000_v34 = vadd.f32 %v3422_v58, %v4221_v19 }
 0xe30   :  { %v1998_v46 = vadd.f32 %v1979_v51, %v4211_v2  ;;  %v3423_v53 = vpop.f32.mrb[54].mxu1 }
 0xe31   :  { %2026 = vadd.xlane.f32.xlu0 %v2025_v41  ;;  %v1982_v24 = vpop.f32.mrb[55].mxu1  ;;  %v2001_v39 = vadd.f32 %v3423_v53, %v4223_v21  ;;  %v4444_v55 = vadd.f32 %v3008_v28, %v2000_v34 }
 0xe32   :  { %v4438_v32 = vadd.f32 %v3008_v28, %v1998_v46  ;;  %v1999_v48 = vadd.f32 %v1982_v24, %v4213_v4 }
 0xe33   :  { %2029 = vadd.xlane.f32.xlu1 %v2028_v50  ;;  %v4450_v25 = vadd.f32 %v3008_v28, %v2001_v39  ;;  %v2037_v4 = vsel %vm1053_vm7, %v4444_v55, 0.0  ;;  %v3571_v39 = vld [vmem:[%s4754_s29] sm:$0xff]   ;;  %v3573_v50 = vld [vmem:[%s4754_s29 + $0x10] sm:$0xff]  }
 0xe34   :  { %v4446_v19 = vadd.f32 %v3008_v28, %v1999_v48  ;;  %v2031_v2 = vsel %vm1053_vm7, %v4438_v32, 0.0  ;;  %3424 = vmatprep.subr.bf16.mxu1 %v3571_v39  ;;  %v3572_v48 = vld [vmem:[%s4754_s29 + $0x8] sm:$0xff]  }
 0xe35   :  { %2032 = vadd.xlane.f32.xlu0 %v2031_v2  ;;  %v2040_v21 = vsel %vm1053_vm7, %v4450_v25, 0.0  ;;  %3425 = vmatpush3.bf16.msra.mxu1 %v3571_v39  ;;  %v3574_v2 = vld [vmem:[%s4754_s29 + $0x18] sm:$0xff]  }
 0xe36   :  { %v2034_v59 = vsel %vm1053_vm7, %v4446_v19, 0.0  ;;  %3426 = vmatprep.subr.bf16.mxu1 %v3572_v48 }
 0xe37   :  { %2035 = vadd.xlane.f32.xlu1 %v2034_v59 }
 0xe39   :  { %2038 = vadd.xlane.f32.xlu0 %v2037_v4  ;;  %3427 = vmatpush3.bf16.msra.mxu1 %v3572_v48 }
 0xe3a   :  { %3428 = vmatprep.subr.bf16.mxu1 %v3573_v50 }
 0xe3b   :  { %2041 = vadd.xlane.f32.xlu1 %v2040_v21 }
 0xe3d   :  { %3429 = vmatpush3.bf16.msra.mxu1 %v3573_v50 }
 0xe3e   :  { %3430 = vmatprep.subr.bf16.mxu1 %v3574_v2 }
 0xe41   :  { %3431 = vmatpush3.bf16.msra.mxu1 %v3574_v2 }
 0xeba   :  { %v2021_v61 = vpop.xlane.xlu0 %2020 }
 0xebb   :  { %v2043_v62 = vmul.f32 0.015625, %v2021_v61 }
 0xebc   :  { %v2024_v17 = vpop.xlane.xlu1 %2023 }
 0xebd   :  { %v4459_v13 = vsub.f32 %v4420_v60, %v2043_v62  ;;  %v2044_v63 = vmul.f32 0.015625, %v2024_v17 }
 0xebe   :  { %v2027_v0 = vpop.xlane.xlu0 %2026 }
 0xebf   :  { %v4462_v3 = vsub.f32 %v4426_v10, %v2044_v63  ;;  %v2045_v54 = vmul.f32 0.015625, %v2027_v0  ;;  %v2059_v52 = vmul.f32 %v4459_v13, %v4459_v13 }
 0xec0   :  { %v2030_v56 = vpop.xlane.xlu1 %2029 }
 0xec1   :  { %v4467_v5 = vsub.f32 %v4424_v1, %v2045_v54  ;;  %v2046_v15 = vmul.f32 0.015625, %v2030_v56  ;;  %v2067_v33 = vsel %vm1053_vm7, %v2059_v52, 0.0  ;;  %v2060_v9 = vmul.f32 %v4462_v3, %v4462_v3 }
 0xec2   :  { %2068 = vadd.xlane.f32.xlu0 %v2067_v33  ;;  %v2033_v12 = vpop.xlane.xlu0 %2032 }
 0xec3   :  { %v4473_v6 = vsub.f32 %v4430_v14, %v2046_v15  ;;  %v2047_v16 = vmul.f32 0.015625, %v2033_v12  ;;  %v2070_v26 = vsel %vm1053_vm7, %v2060_v9, 0.0  ;;  %v2061_v43 = vmul.f32 %v4467_v5, %v4467_v5 }
 0xec4   :  { %2071 = vadd.xlane.f32.xlu1 %v2070_v26  ;;  %v2036_v44 = vpop.xlane.xlu1 %2035 }
 0xec5   :  { %v4479_v45 = vsub.f32 %v4438_v32, %v2047_v16  ;;  %v2048_v22 = vmul.f32 0.015625, %v2036_v44  ;;  %v2073_v23 = vsel %vm1053_vm7, %v2061_v43, 0.0  ;;  %v2062_v28 = vmul.f32 %v4473_v6, %v4473_v6 }
 0xec6   :  { %2074 = vadd.xlane.f32.xlu0 %v2073_v23  ;;  %v2039_v7 = vpop.xlane.xlu0 %2038 }
 0xec7   :  { %v4485_v27 = vsub.f32 %v4446_v19, %v2048_v22  ;;  %v2049_v11 = vmul.f32 0.015625, %v2039_v7  ;;  %v2076_v18 = vsel %vm1053_vm7, %v2062_v28, 0.0  ;;  %v2063_v57 = vmul.f32 %v4479_v45, %v4479_v45  ;;  %v3009_v7 = vld [vmem:[%s4755_s3] ss:$0 sm:$0xff] }
 0xec8   :  { %2077 = vadd.xlane.f32.xlu1 %v2076_v18  ;;  %v2042_v40 = vpop.xlane.xlu1 %2041 }
 0xec9   :  { %v4491_v8 = vsub.f32 %v4444_v55, %v2049_v11  ;;  %v2050_v20 = vmul.f32 0.015625, %v2042_v40  ;;  %v2079_v58 = vsel %vm1053_vm7, %v2063_v57, 0.0  ;;  %v2064_v35 = vmul.f32 %v4485_v27, %v4485_v27 }
 0xeca   :  { %2080 = vadd.xlane.f32.xlu0 %v2079_v58 }
 0xecb   :  { %v4497_v51 = vsub.f32 %v4450_v25, %v2050_v20  ;;  %v2082_v34 = vsel %vm1053_vm7, %v2064_v35, 0.0  ;;  %v2065_v46 = vmul.f32 %v4491_v8, %v4491_v8 }
 0xecc   :  { %2083 = vadd.xlane.f32.xlu1 %v2082_v34 }
 0xecd   :  { %v2085_v53 = vsel %vm1053_vm7, %v2065_v46, 0.0  ;;  %v2066_v41 = vmul.f32 %v4497_v51, %v4497_v51  ;;  %v3010_v46 = vld [vmem:[%s4756_s8] ss:$0 sm:$0xff] }
 0xece   :  { %2086 = vadd.xlane.f32.xlu0 %v2085_v53 }
 0xecf   :  { %v2088_v24 = vsel %vm1053_vm7, %v2066_v41, 0.0 }
 0xed0   :  { %2089 = vadd.xlane.f32.xlu1 %v2088_v24 }
 0xf4f   :  { %v2069_v59 = vpop.xlane.xlu0 %2068 }
 0xf50   :  { %v2091_v4 = vmul.f32 0.015625, %v2069_v59 }
 0xf51   :  { %v2072_v21 = vpop.xlane.xlu1 %2071 }
 0xf52   :  { %v2099_v61 = vadd.f32 1e-05, %v2091_v4  ;;  %v2092_v62 = vmul.f32 0.015625, %v2072_v21 }
 0xf53   :  { %v2075_v17 = vpop.xlane.xlu0 %2074 }
 0xf54   :  { %3635 = vrsqrt.f32 %v2099_v61  ;;  %v2100_v63 = vadd.f32 1e-05, %v2092_v62  ;;  %v2093_v0 = vmul.f32 0.015625, %v2075_v17 }
 0xf55   :  { %v2078_v54 = vpop.xlane.xlu1 %2077 }
 0xf56   :  { %3637 = vrsqrt.f32 %v2100_v63  ;;  %v2101_v52 = vadd.f32 1e-05, %v2093_v0  ;;  %v2094_v56 = vmul.f32 0.015625, %v2078_v54 }
 0xf57   :  { %v2081_v15 = vpop.xlane.xlu0 %2080 }
 0xf58   :  { %3639 = vrsqrt.f32 %v2101_v52  ;;  %v2102_v33 = vadd.f32 1e-05, %v2094_v56  ;;  %v2095_v9 = vmul.f32 0.015625, %v2081_v15 }
 0xf59   :  { %v2084_v12 = vpop.xlane.xlu1 %2083 }
 0xf5a   :  { %3641 = vrsqrt.f32 %v2102_v33  ;;  %v2103_v16 = vadd.f32 1e-05, %v2095_v9  ;;  %v2096_v26 = vmul.f32 0.015625, %v2084_v12 }
 0xf5b   :  { %v2087_v43 = vpop.xlane.xlu0 %2086 }
 0xf5c   :  { %3643 = vrsqrt.f32 %v2103_v16  ;;  %v2104_v44 = vadd.f32 1e-05, %v2096_v26  ;;  %v2097_v22 = vmul.f32 0.015625, %v2087_v43  ;;  %v3575_v26 = vld [vmem:[%s4757_s14] sm:$0xff]   ;;  %v3577_v43 = vld [vmem:[%s4757_s14 + $0x10] sm:$0xff]  }
 0xf5d   :  { %v2090_v23 = vpop.xlane.xlu1 %2089  ;;  %3440 = vmatprep.subr.bf16.mxu0 %v3575_v26 }
 0xf5e   :  { %v3636_v28 = vpop.eup %3635  ;;  %3645 = vrsqrt.f32 %v2104_v44  ;;  %v2105_v11 = vadd.f32 1e-05, %v2097_v22  ;;  %v2098_v18 = vmul.f32 0.015625, %v2090_v23  ;;  %3441 = vmatpush3.bf16.msra.mxu0 %v3575_v26  ;;  %v3578_v44 = vld [vmem:[%s4757_s14 + $0x18] sm:$0xff]   ;;  %v3579_v22 = vld [vmem:[%s4757_s14 + $0x20] sm:$0xff]   ;;  %v3580_v23 = vld [vmem:[%s4757_s14 + $0x28] sm:$0xff]  }
 0xf5f   :  { %v2115_v57 = vmul.f32 %v3636_v28, %v4459_v13  ;;  %v3581_v28 = vld [vmem:[%s4757_s14 + $0x30] sm:$0xff]  }
 0xf60   :  { %v3638_v40 = vpop.eup %3637  ;;  %3647 = vrsqrt.f32 %v2105_v11  ;;  %v2106_v20 = vadd.f32 1e-05, %v2098_v18  ;;  %v3583_v11 = vld [vmem:[%s3921_s13] sm:$0xff]   ;;  %v3584_v18 = vld [vmem:[%s3921_s13 + $0x8] sm:$0xff]  }
 0xf61   :  { %v2116_v58 = vmul.f32 %v3638_v40, %v4462_v3  ;;  %v2129_v35 = vmul.f32 %v3009_v7, %v2115_v57  ;;  %3464 = vmatprep.subr.bf16.mxu1 %v3583_v11  ;;  %v3011_v57 = vld [vmem:[%s4758_s19] ss:$0 sm:$0xff] }
 0xf62   :  { %v3640_v34 = vpop.eup %3639  ;;  %3649 = vrsqrt.f32 %v2106_v20 }
 0xf63   :  { %v2117_v53 = vmul.f32 %v3640_v34, %v4467_v5  ;;  %v2130_v41 = vmul.f32 %v3009_v7, %v2116_v58  ;;  %v2143_v50 = vadd.f32 %v3010_v46, %v2129_v35 }
 0xf64   :  { %v3642_v24 = vpop.eup %3641 }
 0xf65   :  { %v2131_v39 = vmul.f32 %v3009_v7, %v2117_v53  ;;  %v2118_v48 = vmul.f32 %v3642_v24, %v4473_v6  ;;  %v2144_v2 = vadd.f32 %v3010_v46, %v2130_v41 }
 0xf66   :  { %v3644_v59 = vpop.eup %3643 }
 0xf67   :  { %v2132_v13 = vmul.f32 %v3009_v7, %v2118_v48  ;;  %v2119_v4 = vmul.f32 %v3644_v59, %v4479_v45  ;;  %v2151_v21 = vpack.c.bf16 %v2144_v2, %v2143_v50  ;;  %v2145_v3 = vadd.f32 %v3010_v46, %v2131_v39 }
 0xf68   :  { %v3646_v61 = vpop.eup %3645 }
 0xf69   :  { %v2146_v62 = vadd.f32 %v3010_v46, %v2132_v13  ;;  %v2120_v17 = vmul.f32 %v3646_v61, %v4485_v27  ;;  %3432 = vmatprep.mubr.msk.bf16.mxu1 %vm1053_vm7, %v2151_v21  ;;  %v2133_v5 = vmul.f32 %v3009_v7, %v2119_v4 }
 0xf6a   :  { %v3648_v63 = vpop.eup %3647 }
 0xf6b   :  { %v2121_v0 = vmul.f32 %v3648_v63, %v4491_v8  ;;  %v2152_v6 = vpack.c.bf16 %v2146_v62, %v2145_v3  ;;  %v2134_v54 = vmul.f32 %v3009_v7, %v2120_v17  ;;  %v2147_v45 = vadd.f32 %v3010_v46, %v2133_v5 }
 0xf6c   :  { %v3650_v52 = vpop.eup %3649 }
 0xf6d   :  { %v2122_v56 = vmul.f32 %v3650_v52, %v4497_v51  ;;  %3433 = vmatmul.mubr.msk.bf16.vlgmr.msra.gmra.mrb[56].mxu1 %vm1053_vm7, %v2152_v6  ;;  %v2148_v15 = vadd.f32 %v3010_v46, %v2134_v54  ;;  %v2135_v33 = vmul.f32 %v3009_v7, %v2121_v0  ;;  %v3576_v51 = vld [vmem:[%s4757_s14 + $0x8] sm:$0xff]  }
 0xf6e   :  { %3442 = vmatprep.subr.bf16.mxu0 %v3576_v51  ;;  %3465 = vmatpush3.bf16.msra.mxu1 %v3583_v11 }
 0xf6f   :  { %v2153_v27 = vpack.c.bf16 %v2148_v15, %v2147_v45  ;;  %v2136_v9 = vmul.f32 %v3009_v7, %v2122_v56  ;;  %v2149_v12 = vadd.f32 %v3010_v46, %v2135_v33  ;;  %3443 = vmatpush3.bf16.msra.mxu0 %v3576_v51  ;;  %v3582_v7 = vld [vmem:[%s4757_s14 + $0x38] sm:$0xff]   ;;  %3466 = vmatprep.subr.bf16.mxu1 %v3584_v18 }
 0xf70   :  { %3444 = vmatprep.subr.bf16.mxu0 %v3577_v43 }
 0xf71   :  { %3436 = vmatprep.mubr.msk.bf16.mxu1 %vm1053_vm7, %v2153_v27  ;;  %v2150_v8 = vadd.f32 %v3010_v46, %v2136_v9 }
 0xf72   :  { %3467 = vmatpush3.bf16.msra.mxu1 %v3584_v18 }
 0xf73   :  { %v2154_v16 = vpack.c.bf16 %v2150_v8, %v2149_v12  ;;  %3445 = vmatpush3.bf16.msra.mxu0 %v3577_v43 }
 0xf74   :  { %3446 = vmatprep.subr.bf16.mxu0 %v3578_v44 }
 0xf75   :  { %3437 = vmatmul.mubr.msk.bf16.gmra.mrb[60].mxu1 %vm1053_vm7, %v2154_v16 }
 0xf77   :  { %3447 = vmatpush3.bf16.msra.mxu0 %v3578_v44 }
 0xf78   :  { %3448 = vmatprep.subr.bf16.mxu0 %v3579_v22 }
 0xf7b   :  { %3449 = vmatpush3.bf16.msra.mxu0 %v3579_v22 }
 0xf7c   :  { %3450 = vmatprep.subr.bf16.mxu0 %v3580_v23 }
 0xf7f   :  { %3451 = vmatpush3.bf16.msra.mxu0 %v3580_v23 }
 0xf80   :  { %3452 = vmatprep.subr.bf16.mxu0 %v3581_v28 }
 0xf83   :  { %3453 = vmatpush3.bf16.msra.mxu0 %v3581_v28 }
 0xf84   :  { %3454 = vmatprep.subr.bf16.mxu0 %v3582_v7 }
 0xf87   :  { %3455 = vmatpush3.bf16.msra.mxu0 %v3582_v7 }
0x1040   :  { %v3434_v40 = vpop.f32.mrb[56].mxu1 }
0x1041   :  { %v4535_v20 = vadd.f32 %v3434_v40, %v3011_v57  ;;  %v2240_v58 = vpop.f32.mrb[57].mxu1 }
0x1042   :  { %v4537_v35 = vadd.f32 %v3011_v57, %v2240_v58  ;;  %v3435_v34 = vpop.f32.mrb[58].mxu1 }
0x1043   :  { %v2273_v46 = vmul.f32 %v4535_v20, %v4535_v20  ;;  %v4541_v53 = vadd.f32 %v3435_v34, %v3011_v57  ;;  %v2243_v41 = vpop.f32.mrb[59].mxu1 }
0x1044   :  { %v2271_v24 = vmul.f32 %v4537_v35, %v4537_v35  ;;  %v4545_v39 = vadd.f32 %v3011_v57, %v2243_v41 }
0x1045   :  { %v2281_v48 = vmul.f32 %v2273_v46, %v4535_v20  ;;  %v2274_v50 = vmul.f32 %v4541_v53, %v4541_v53 }
0x1046   :  { %v2279_v2 = vmul.f32 %v2271_v24, %v4537_v35  ;;  %v2272_v59 = vmul.f32 %v4545_v39, %v4545_v39 }
0x1047   :  { %v2289_v13 = vmul.f32 0.044715, %v2281_v48  ;;  %v2282_v4 = vmul.f32 %v2274_v50, %v4541_v53 }
0x1048   :  { %v2287_v21 = vmul.f32 0.044715, %v2279_v2  ;;  %v2280_v61 = vmul.f32 %v2272_v59, %v4545_v39  ;;  %v3438_v3 = vpop.f32.mrb[60].mxu1 }
0x1049   :  { %v2297_v62 = vadd.f32 %v2289_v13, %v4535_v20  ;;  %v2290_v17 = vmul.f32 0.044715, %v2282_v4  ;;  %v4556_v5 = vadd.f32 %v3438_v3, %v3011_v57  ;;  %v2256_v63 = vpop.f32.mrb[61].mxu1 }
0x104a   :  { %v2295_v0 = vadd.f32 %v2287_v21, %v4537_v35  ;;  %v2288_v6 = vmul.f32 0.044715, %v2280_v61  ;;  %v4559_v54 = vadd.f32 %v3011_v57, %v2256_v63  ;;  %v3439_v52 = vpop.f32.mrb[62].mxu1 }
0x104b   :  { %v2305_v56 = vmul.f32 0.7978846, %v2297_v62  ;;  %v2298_v45 = vadd.f32 %v2290_v17, %v4541_v53  ;;  %v2277_v15 = vmul.f32 %v4556_v5, %v4556_v5  ;;  %v4564_v33 = vadd.f32 %v3439_v52, %v3011_v57  ;;  %v2259_v27 = vpop.f32.mrb[63].mxu1 }
0x104c   :  { %v2303_v9 = vmul.f32 0.7978846, %v2295_v0  ;;  %v2296_v12 = vadd.f32 %v2288_v6, %v4545_v39  ;;  %v2275_v8 = vmul.f32 %v4559_v54, %v4559_v54  ;;  %v4569_v16 = vadd.f32 %v3011_v57, %v2259_v27 }
0x104d   :  { %3651 = vtanh.f32 %v2305_v56  ;;  %v2306_v26 = vmul.f32 0.7978846, %v2298_v45  ;;  %v2285_v51 = vmul.f32 %v2277_v15, %v4556_v5  ;;  %v2278_v43 = vmul.f32 %v4564_v33, %v4564_v33 }
0x104e   :  { %3653 = vtanh.f32 %v2303_v9  ;;  %v2304_v44 = vmul.f32 0.7978846, %v2296_v12  ;;  %v2283_v22 = vmul.f32 %v2275_v8, %v4559_v54  ;;  %v2276_v23 = vmul.f32 %v4569_v16, %v4569_v16 }
0x104f   :  { %3655 = vtanh.f32 %v2306_v26  ;;  %v2293_v28 = vmul.f32 0.044715, %v2285_v51  ;;  %v2286_v7 = vmul.f32 %v2278_v43, %v4564_v33 }
0x1050   :  { %3657 = vtanh.f32 %v2304_v44  ;;  %v2291_v11 = vmul.f32 0.044715, %v2283_v22  ;;  %v2284_v18 = vmul.f32 %v2276_v23, %v4569_v16 }
0x1051   :  { %v2301_v57 = vadd.f32 %v2293_v28, %v4556_v5  ;;  %v2294_v40 = vmul.f32 0.044715, %v2286_v7 }
0x1052   :  { %v2299_v58 = vadd.f32 %v2291_v11, %v4559_v54  ;;  %v2292_v34 = vmul.f32 0.044715, %v2284_v18 }
0x1053   :  { %v2309_v46 = vmul.f32 0.7978846, %v2301_v57  ;;  %v2302_v41 = vadd.f32 %v2294_v40, %v4564_v33 }
0x1054   :  { %v2307_v24 = vmul.f32 0.7978846, %v2299_v58  ;;  %v2300_v48 = vadd.f32 %v2292_v34, %v4569_v16  ;;  %v3585_v34 = vld [vmem:[%s3921_s13 + $0x10] sm:$0xff]  }
0x1055   :  { %3659 = vtanh.f32 %v2309_v46  ;;  %v2310_v50 = vmul.f32 0.7978846, %v2302_v41  ;;  %3468 = vmatprep.subr.bf16.mxu1 %v3585_v34  ;;  %v3586_v46 = vld [vmem:[%s3921_s13 + $0x18] sm:$0xff]   ;;  %s3779_s13 = smov [#allocation2]  }
0x1056   :  { %3661 = vtanh.f32 %v2307_v24  ;;  %v2308_v2 = vmul.f32 0.7978846, %v2300_v48  ;;  %3469 = vmatpush3.bf16.msra.mxu1 %v3585_v34  ;;  %s2790_s30 = sshll.u32 %s3779_s13, 4  ;;  %s2791_s30 = int_to_ptr.vmem [resolvable:$true] %s2790_s30 }
0x1057   :  { %v3652_v59 = vpop.eup %3651  ;;  %3663 = vtanh.f32 %v2310_v50  ;;  %3470 = vmatprep.subr.bf16.mxu1 %v3586_v46  ;;  %s3699_s12 = scalar_lea.vmem %s2791_s30, 512  ;;  %p3704_p1 = scmp.lt.s32.totalorder %s2791_s30, %s2791_s30 }
0x1058   :  { %v3654_v13 = vpop.eup %3653  ;;  %v2321_v4 = vadd.f32 1.0, %v3652_v59  ;;  %3665 = vtanh.f32 %v2308_v2  ;;  %p3700_p0 = scmp.ne.s32.totalorder %s2791_s30, %s3699_s12  ;;  %p3705_p2 = scmp.lt.s32.totalorder %s3699_s12, %s3699_s12 }
0x1059   :  { %v3656_v21 = vpop.eup %3655  ;;  %v2319_v61 = vadd.f32 1.0, %v3654_v13 }
0x105a   :  { %v3658_v3 = vpop.eup %3657  ;;  %v2329_v62 = vmul.f32 0.5, %v2321_v4  ;;  %v2322_v17 = vadd.f32 1.0, %v3656_v21  ;;  %3471 = vmatpush3.bf16.msra.mxu1 %v3586_v46  ;;  %p3706_p3 = por %p3705_p2, %p3704_p1 }
0x105b   :  { %v2320_v63 = vadd.f32 1.0, %v3658_v3  ;;  %v2327_v0 = vmul.f32 0.5, %v2319_v61 }
0x105c   :  { %v2330_v6 = vmul.f32 0.5, %v2322_v17  ;;  %v2337_v56 = vmul.f32 %v2329_v62, %v4535_v20  ;;  %p3707_p4 = pnand %p3706_p3, %p3700_p0 }
0x105d   :  { %v2328_v52 = vmul.f32 0.5, %v2320_v63  ;;  %v2335_v27 = vmul.f32 %v2327_v0, %v4537_v35 }
0x105e   :  { %v2338_v45 = vmul.f32 %v2330_v6, %v4541_v53 }
0x105f   :  { %v3660_v15 = vpop.eup %3659  ;;  %v2336_v9 = vmul.f32 %v2328_v52, %v4545_v39 }
0x1060   :  { %v3662_v12 = vpop.eup %3661  ;;  %v2344_v8 = vpack.c.bf16 %v2338_v45, %v2337_v56  ;;  %v2325_v26 = vadd.f32 1.0, %v3660_v15 }
0x1061   :  { %v3664_v51 = vpop.eup %3663  ;;  %v2343_v43 = vpack.c.bf16 %v2336_v9, %v2335_v27  ;;  %v2323_v44 = vadd.f32 1.0, %v3662_v12 }
0x1062   :  { %v3666_v22 = vpop.eup %3665  ;;  %v2326_v23 = vadd.f32 1.0, %v3664_v51  ;;  %v2333_v28 = vmul.f32 0.5, %v2325_v26 }
0x1063   :  { %3456 = vmatprep.mubr.bf16.mxu0 %v2343_v43  ;;  %v2324_v7 = vadd.f32 1.0, %v3666_v22  ;;  %v2331_v20 = vmul.f32 0.5, %v2323_v44 }
0x1064   :  { %3457 = vmatmul.mubr.bf16.vlgmr.msra.gmra.mrb[56].mxu0 %v2344_v8  ;;  %v2334_v53 = vmul.f32 0.5, %v2326_v23  ;;  %v2341_v35 = vmul.f32 %v2333_v28, %v4556_v5 }
0x1065   :  { %v2332_v11 = vmul.f32 0.5, %v2324_v7  ;;  %v2339_v18 = vmul.f32 %v2331_v20, %v4559_v54 }
0x1066   :  { %v2342_v39 = vmul.f32 %v2334_v53, %v4564_v33  ;;  %v3028_v33 = vld [vmem:[%s4759_s24] ss:$0 sm:$0xff] }
0x1067   :  { %v2340_v57 = vmul.f32 %v2332_v11, %v4569_v16 }
0x1068   :  { %v2346_v40 = vpack.c.bf16 %v2342_v39, %v2341_v35 }
0x1069   :  { %v2345_v58 = vpack.c.bf16 %v2340_v57, %v2339_v18 }
0x106b   :  { %3460 = vmatprep.mubr.bf16.mxu0 %v2345_v58 }
0x106c   :  { %3461 = vmatmul.mubr.bf16.gmra.mrb[60].mxu0 %v2346_v40 }
0x1137   :  { %v3458_v41 = vpop.f32.mrb[56].mxu0 }
0x1138   :  { %v2478_v5 = vadd.f32 %v3458_v41, %v4424_v1  ;;  %v2445_v24 = vpop.f32.mrb[57].mxu0 }
0x1139   :  { %v2476_v48 = vadd.f32 %v2445_v24, %v4420_v60  ;;  %v3459_v54 = vpop.f32.mrb[58].mxu0 }
0x113a   :  { %v2479_v16 = vadd.f32 %v3459_v54, %v4430_v14  ;;  %v2448_v50 = vpop.f32.mrb[59].mxu0  ;;  %v2493_v59 = vadd.f32 %v3028_v33, %v2478_v5 }
0x113b   :  { %v2477_v2 = vadd.f32 %v2448_v50, %v4426_v10  ;;  %v2491_v4 = vadd.f32 %v3028_v33, %v2476_v48 }
0x113c   :  { %v2494_v13 = vadd.f32 %v3028_v33, %v2479_v16 }
0x113d   :  { %v2492_v21 = vadd.f32 %v3028_v33, %v2477_v2 }
0x113e   :  { %v2500_v61 = vpack.c.bf16 %v2494_v13, %v2493_v59 }
0x113f   :  { %v2499_v3 = vpack.c.bf16 %v2492_v21, %v2491_v4  ;;  %v3462_v62 = vpop.f32.mrb[60].mxu0 }
0x1140   :  { %v2482_v17 = vadd.f32 %v3462_v62, %v4444_v55  ;;  %v2461_v1 = vpop.f32.mrb[61].mxu0 }
0x1141   :  { %v2480_v63 = vadd.f32 %v2461_v1, %v4438_v32  ;;  %v3463_v60 = vpop.f32.mrb[62].mxu0  ;;  %3472 = vmatprep.mubr.msk.bf16.mxu1 %vm1053_vm7, %v2499_v3  ;;  %v3029_v32 = vld [vmem:[%s3926_s20] ss:$0 sm:$0xff] }
0x1142   :  { %v2483_v14 = vadd.f32 %v3463_v60, %v4450_v25  ;;  %v2464_v0 = vpop.f32.mrb[63].mxu0  ;;  %3473 = vmatmul.mubr.msk.bf16.vlgmr.msra.gmra.mrb[64].mxu1 %vm1053_vm7, %v2500_v61  ;;  %v2497_v6 = vadd.f32 %v3028_v33, %v2482_v17 }
0x1143   :  { %v2481_v10 = vadd.f32 %v2464_v0, %v4446_v19  ;;  %v2495_v56 = vadd.f32 %v3028_v33, %v2480_v63 }
0x1144   :  { %v2498_v52 = vadd.f32 %v3028_v33, %v2483_v14 }
0x1145   :  { %v2496_v45 = vadd.f32 %v3028_v33, %v2481_v10 }
0x1146   :  { %v2502_v15 = vpack.c.bf16 %v2498_v52, %v2497_v6 }
0x1147   :  { %v2501_v55 = vpack.c.bf16 %v2496_v45, %v2495_v56 }
0x1149   :  { %3476 = vmatprep.mubr.msk.bf16.mxu1 %vm1053_vm7, %v2501_v55 }
0x114a   :  { %3477 = vmatmul.mubr.msk.bf16.gmra.mrb[68].mxu1 %vm1053_vm7, %v2502_v15  ;;  %v3778_v15 = vmov 0.0  }
0x114b   :  { %v2896_v55 = vsel %vm4760_vm8, 1.0, %v3778_v15  ;;  %v2902_v29 = vsel %vm4763_vm10, 1.0, %v3778_v15  ;;  %v2904_v36 = vsel %vm771_vm0, 1.0, %v3778_v15  ;;  %v2906_v38 = vsel %vm773_vm5, 1.0, %v3778_v15 }
0x114c   :  { %v2908_v42 = vsel %vm775_vm2, 1.0, %v3778_v15  ;;  %v2910_v31 = vsel %vm777_vm3, 1.0, %v3778_v15 }
0x1215   :  { %v3474_v27 = vpop.f32.mrb[64].mxu1 }
0x1216   :  { %v2588_v9 = vpop.f32.mrb[65].mxu1  ;;  %v4609_v8 = vadd.f32 %v3474_v27, %v3029_v32  ;;  %v2898_v27 = vsel %vm4761_vm9, 1.0, %v3778_v15 }
0x1217   :  { %v4607_v12 = vadd.f32 %v3029_v32, %v2588_v9  ;;  %v3475_v25 = vpop.f32.mrb[66].mxu1 }
0x1218   :  { %v4611_v26 = vadd.f32 %v3475_v25, %v3029_v32  ;;  %v2591_v19 = vpop.f32.mrb[67].mxu1  ;;  %v2900_v25 = vsel %vm4762_vm11, 1.0, %v3778_v15 }
0x1219   :  { %v4613_v51 = vadd.f32 %v3029_v32, %v2591_v19  ;;  %2659 = vmax.xlane.f32.xlu0 %v4607_v12  ;;  %v2741_v19 = vmul.f32 %v2900_v25, %v4609_v8 }
0x121a   :  { %v3062_v43 = vpack.c.bf16 %v4611_v26, %v4609_v8 }
0x121b   :  { %v3057_v44 = vpack.c.bf16 %v4613_v51, %v4607_v12  ;;  %2661 = vmax.xlane.f32.xlu1 %v4613_v51  ;;  %v2740_v9 = vmul.f32 %v2898_v27, %v4613_v51 }
0x121c   :  { %3074 = vst [vmem:[#allocation2 + $0x8] sm:$0xff] %v3062_v43  }
0x121d   :  { %3058 = vst [vmem:[#allocation2] sm:$0xff] %v3057_v44   ;;  %2663 = vmax.xlane.f32.xlu0 %v4609_v8  ;;  %v3478_v22 = vpop.f32.mrb[68].mxu1 }
0x121e   :  { %v2604_v23 = vpop.f32.mrb[69].mxu1  ;;  %v4625_v20 = vadd.f32 %v3478_v22, %v3029_v32 }
0x121f   :  { %v4622_v28 = vadd.f32 %v3029_v32, %v2604_v23  ;;  %2665 = vmax.xlane.f32.xlu1 %v4611_v26  ;;  %v3479_v7 = vpop.f32.mrb[70].mxu1 }
0x1220   :  { %v4627_v53 = vadd.f32 %v3479_v7, %v3029_v32  ;;  %v2607_v11 = vpop.f32.mrb[71].mxu1 }
0x1221   :  { %v4629_v35 = vadd.f32 %v3029_v32, %v2607_v11  ;;  %2667 = vmax.xlane.f32.xlu0 %v4622_v28  ;;  %v2739_v32 = vmul.f32 %v2896_v55, %v4607_v12 }
0x1222   :  { %v3072_v39 = vpack.c.bf16 %v4627_v53, %v4625_v20  ;;  %v2746_v43 = vmul.f32 %v2910_v31, %v4627_v53 }
0x1223   :  { %v3067_v18 = vpack.c.bf16 %v4629_v35, %v4622_v28  ;;  %2669 = vmax.xlane.f32.xlu1 %v4629_v35 }
0x1224   :  { %3076 = vst [vmem:[#allocation2 + $0x18] sm:$0xff] %v3072_v39  }
0x1225   :  { %3075 = vst [vmem:[#allocation2 + $0x10] sm:$0xff] %v3067_v18   ;;  %2671 = vmax.xlane.f32.xlu0 %v4625_v20 }
0x1227   :  { %2673 = vmax.xlane.f32.xlu1 %v4627_v53 }
0x12a6   :  { %v4639_v57 = vpop.xlane.xlu0 %2659 }
0x12a7   :  { %v2675_v40 = vsub.f32 %v4607_v12, %v4639_v57  ;;  %v2742_v12 = vmul.f32 %v2902_v29, %v4611_v26 }
0x12a8   :  { %v4643_v58 = vpop.xlane.xlu1 %2661 }
0x12a9   :  { %v2683_v34 = vmul.f32 1.442695, %v2675_v40  ;;  %v2676_v46 = vsub.f32 %v4613_v51, %v4643_v58  ;;  %v2743_v51 = vmul.f32 %v2904_v36, %v4622_v28 }
0x12aa   :  { %v4647_v41 = vpop.xlane.xlu0 %2663 }
0x12ab   :  { %3667 = vpow2.f32 %v2683_v34  ;;  %v2685_v5 = vmul.f32 1.442695, %v2676_v46  ;;  %v2677_v24 = vsub.f32 %v4609_v8, %v4647_v41  ;;  %v2744_v8 = vmul.f32 %v2906_v38, %v4629_v35 }
0x12ac   :  { %v4651_v33 = vpop.xlane.xlu1 %2665 }
0x12ad   :  { %3669 = vpow2.f32 %v2685_v5  ;;  %v2687_v48 = vmul.f32 1.442695, %v2677_v24  ;;  %v2678_v54 = vsub.f32 %v4611_v26, %v4651_v33  ;;  %v2745_v26 = vmul.f32 %v2908_v42, %v4625_v20 }
0x12ae   :  { %v4655_v16 = vpop.xlane.xlu0 %2667 }
0x12af   :  { %3671 = vpow2.f32 %v2687_v48  ;;  %v2689_v50 = vmul.f32 1.442695, %v2678_v54  ;;  %v2679_v2 = vsub.f32 %v4622_v28, %v4655_v16 }
0x12b0   :  { %v4659_v59 = vpop.xlane.xlu1 %2669 }
0x12b1   :  { %3673 = vpow2.f32 %v2689_v50  ;;  %v2691_v13 = vmul.f32 1.442695, %v2679_v2  ;;  %v2680_v4 = vsub.f32 %v4629_v35, %v4659_v59 }
0x12b2   :  { %v4663_v21 = vpop.xlane.xlu0 %2671 }
0x12b3   :  { %3675 = vpow2.f32 %v2691_v13  ;;  %v2693_v61 = vmul.f32 1.442695, %v2680_v4  ;;  %v2681_v3 = vsub.f32 %v4625_v20, %v4663_v21 }
0x12b4   :  { %v4667_v62 = vpop.xlane.xlu1 %2673 }
0x12b5   :  { %v3668_v17 = vpop.eup %3667  ;;  %3677 = vpow2.f32 %v2693_v61  ;;  %v2695_v1 = vmul.f32 1.442695, %v2681_v3  ;;  %v2682_v63 = vsub.f32 %v4627_v53, %v4667_v62 }
0x12b6   :  { %2699 = vadd.xlane.f32.xlu0 %v3668_v17 }
0x12b7   :  { %v3670_v60 = vpop.eup %3669  ;;  %3679 = vpow2.f32 %v2695_v1  ;;  %v2697_v14 = vmul.f32 1.442695, %v2682_v63 }
0x12b8   :  { %2701 = vadd.xlane.f32.xlu1 %v3670_v60 }
0x12b9   :  { %v3672_v0 = vpop.eup %3671  ;;  %3681 = vpow2.f32 %v2697_v14 }
0x12ba   :  { %2703 = vadd.xlane.f32.xlu0 %v3672_v0 }
0x12bb   :  { %v3674_v10 = vpop.eup %3673 }
0x12bc   :  { %2705 = vadd.xlane.f32.xlu1 %v3674_v10 }
0x12bd   :  { %v3676_v6 = vpop.eup %3675 }
0x12be   :  { %2707 = vadd.xlane.f32.xlu0 %v3676_v6 }
0x12bf   :  { %v3678_v52 = vpop.eup %3677 }
0x12c0   :  { %2709 = vadd.xlane.f32.xlu1 %v3678_v52 }
0x12c1   :  { %v3680_v56 = vpop.eup %3679 }
0x12c2   :  { %2711 = vadd.xlane.f32.xlu0 %v3680_v56 }
0x12c3   :  { %v3682_v45 = vpop.eup %3681 }
0x12c4   :  { %2713 = vadd.xlane.f32.xlu1 %v3682_v45 }
0x12c6   :  { %2747 = vadd.xlane.f32.xlu0 %v2739_v32 }
0x12c8   :  { %2749 = vadd.xlane.f32.xlu1 %v2740_v9 }
0x12ca   :  { %2751 = vadd.xlane.f32.xlu0 %v2741_v19 }
0x12cc   :  { %2753 = vadd.xlane.f32.xlu1 %v2742_v12 }
0x12ce   :  { %2755 = vadd.xlane.f32.xlu0 %v2743_v51 }
0x12d0   :  { %2757 = vadd.xlane.f32.xlu1 %v2744_v8 }
0x12d2   :  { %2759 = vadd.xlane.f32.xlu0 %v2745_v26 }
0x12d4   :  { %2761 = vadd.xlane.f32.xlu1 %v2746_v43 }
0x12d5   :  { %3710 = shalt.err (!%p3707_p4)
}
0x12d6   :  { %s3711_s20 = scalar_lea.hbm %s3931_s6, 512 }
0x12d7   :  { %p3712_p5 = scmp.ne.s32.totalorder %s3931_s6, %s3711_s20  ;;  %p3715_p6 = scmp.lt.u32.totalorder %s3711_s20, %s3931_s6 }
0x12d9   :  { %p3717_p7 = pnand %p3715_p6, %p3712_p5 }
0x12db   :  { %3720 = shalt.err (!%p3717_p7)
}
0x12dc   :  { %s3780_s27 = smov 64   ;;  %s3781_s7 = smov 4  }
0x12dd   :  { %2796 = dma.vmem_to_hbm [thread:$0]  %s2791_s30, 512, %s3931_s6, [#allocation3], %s3780_s27, %s3780_s27, %s3781_s7  }
0x12de   :  { %s3782_s6 = smov [#allocation4]  }
0x12df   :  { %s2803_s10 = sshll.u32 %s3782_s6, 4  ;;  %s2804_s10 = int_to_ptr.vmem [resolvable:$true] %s2803_s10 }
0x12e0   :  { %s3721_s11 = scalar_lea.vmem %s2804_s10, 128  ;;  %p3726_p9 = scmp.lt.s32.totalorder %s2804_s10, %s2804_s10 }
0x12e1   :  { %p3722_p8 = scmp.ne.s32.totalorder %s2804_s10, %s3721_s11  ;;  %p3727_p10 = scmp.lt.s32.totalorder %s3721_s11, %s3721_s11 }
0x12e3   :  { %p3728_p11 = por %p3727_p10, %p3726_p9 }
0x12e5   :  { %p3729_p12 = pnand %p3728_p11, %p3722_p8 }
0x1343   :  { %v2700_v30 = vpop.xlane.xlu0 %2699 }
0x1344   :  { %3683 = vlog2.f32 %v2700_v30 }
0x1345   :  { %v2702_v37 = vpop.xlane.xlu1 %2701 }
0x1346   :  { %3685 = vlog2.f32 %v2702_v37 }
0x1347   :  { %v2704_v47 = vpop.xlane.xlu0 %2703 }
0x1348   :  { %3687 = vlog2.f32 %v2704_v47 }
0x1349   :  { %v2706_v49 = vpop.xlane.xlu1 %2705 }
0x134a   :  { %3689 = vlog2.f32 %v2706_v49 }
0x134b   :  { %v2708_v44 = vpop.xlane.xlu0 %2707 }
0x134c   :  { %3691 = vlog2.f32 %v2708_v44 }
0x134d   :  { %v2710_v22 = vpop.xlane.xlu1 %2709 }
0x134e   :  { %v3684_v23 = vpop.eup %3683  ;;  %3693 = vlog2.f32 %v2710_v22 }
0x134f   :  { %v2716_v28 = vmul.f32 0.6931472, %v3684_v23  ;;  %v2712_v7 = vpop.xlane.xlu0 %2711 }
0x1350   :  { %v3686_v20 = vpop.eup %3685  ;;  %3695 = vlog2.f32 %v2712_v7 }
0x1351   :  { %v2718_v53 = vmul.f32 0.6931472, %v3686_v20  ;;  %v2714_v11 = vpop.xlane.xlu1 %2713  ;;  %v2731_v39 = vadd.f32 %v2716_v28, %v4639_v57 }
0x1352   :  { %v3688_v35 = vpop.eup %3687  ;;  %3697 = vlog2.f32 %v2714_v11 }
0x1353   :  { %v2720_v18 = vmul.f32 0.6931472, %v3688_v35  ;;  %v2748_v40 = vpop.xlane.xlu0 %2747  ;;  %v2732_v34 = vadd.f32 %v2718_v53, %v4643_v58 }
0x1354   :  { %v3690_v46 = vpop.eup %3689  ;;  %v2763_v50 = vsub.f32 %v2731_v39, %v2748_v40 }
0x1355   :  { %v2722_v5 = vmul.f32 0.6931472, %v3690_v46  ;;  %v2750_v24 = vpop.xlane.xlu1 %2749  ;;  %v2733_v48 = vadd.f32 %v2720_v18, %v4647_v41 }
0x1356   :  { %v3692_v54 = vpop.eup %3691  ;;  %v2764_v2 = vsub.f32 %v2732_v34, %v2750_v24 }
0x1357   :  { %v2724_v13 = vmul.f32 0.6931472, %v3692_v54  ;;  %v2752_v4 = vpop.xlane.xlu0 %2751  ;;  %v2734_v61 = vadd.f32 %v2722_v5, %v4651_v33 }
0x1358   :  { %v3694_v3 = vpop.eup %3693  ;;  %v2771_v17 = vadd.f32 %v2764_v2, %v2763_v50  ;;  %v2765_v1 = vsub.f32 %v2733_v48, %v2752_v4 }
0x1359   :  { %v2726_v57 = vmul.f32 0.6931472, %v3694_v3  ;;  %v2754_v63 = vpop.xlane.xlu1 %2753  ;;  %v2735_v60 = vadd.f32 %v2724_v13, %v4655_v16 }
0x135a   :  { %v3696_v58 = vpop.eup %3695  ;;  %v2772_v14 = vadd.f32 %v2771_v17, %v2765_v1  ;;  %v2766_v0 = vsub.f32 %v2734_v61, %v2754_v63 }
0x135b   :  { %v2728_v10 = vmul.f32 0.6931472, %v3696_v58  ;;  %v2756_v6 = vpop.xlane.xlu0 %2755  ;;  %v2736_v41 = vadd.f32 %v2726_v57, %v4659_v59 }
0x135c   :  { %v3698_v52 = vpop.eup %3697  ;;  %v2773_v56 = vadd.f32 %v2772_v14, %v2766_v0  ;;  %v2767_v45 = vsub.f32 %v2735_v60, %v2756_v6 }
0x135d   :  { %v2730_v15 = vmul.f32 0.6931472, %v3698_v52  ;;  %v2758_v55 = vpop.xlane.xlu1 %2757  ;;  %v2737_v33 = vadd.f32 %v2728_v10, %v4663_v21 }
0x135e   :  { %v2774_v32 = vadd.f32 %v2773_v56, %v2767_v45  ;;  %v2768_v27 = vsub.f32 %v2736_v41, %v2758_v55 }
0x135f   :  { %v2760_v9 = vpop.xlane.xlu0 %2759  ;;  %v2738_v25 = vadd.f32 %v2730_v15, %v4667_v62 }
0x1360   :  { %v2775_v16 = vadd.f32 %v2774_v32, %v2768_v27  ;;  %v2769_v19 = vsub.f32 %v2737_v33, %v2760_v9 }
0x1361   :  { %v2762_v29 = vpop.xlane.xlu1 %2761 }
0x1362   :  { %v2776_v12 = vadd.f32 %v2775_v16, %v2769_v19  ;;  %v2770_v36 = vsub.f32 %v2738_v25, %v2762_v29 }
0x1364   :  { %v2777_v51 = vadd.f32 %v2776_v12, %v2770_v36 }
0x1366   :  { %v2778_v38 = vrot.slane %v2777_v51, 4 }
0x1368   :  { %v2779_v59 = vadd.f32 %v2778_v38, %v2777_v51 }
0x136a   :  { %v2780_v8 = vrot.slane %v2779_v59, 2 }
0x136c   :  { %v2781_v42 = vadd.f32 %v2780_v8, %v2779_v59 }
0x136e   :  { %v2782_v26 = vrot.slane %v2781_v42, 1 }
0x1370   :  { %v2783_v31 = vadd.f32 %v2782_v26, %v2781_v42 }
0x1372   :  { %2784 = vst [vmem:[#allocation4] sm:$0xff] %v2783_v31 }
0x1373   :  { %3732 = shalt.err (!%p3729_p12)
}
0x1374   :  { %s3733_s15 = scalar_lea.hbm %s3936_s4, 128 }
0x1375   :  { %p3734_p13 = scmp.ne.s32.totalorder %s3936_s4, %s3733_s15  ;;  %p3737_p0 = scmp.lt.u32.totalorder %s3733_s15, %s3936_s4 }
0x1377   :  { %p3739_p1 = pnand %p3737_p0, %p3734_p13 }
0x1379   :  { %3742 = shalt.err (!%p3739_p1)
}
0x137a   :  { %2806 = dma.vmem_to_hbm [thread:$0]  %s2804_s10, 128, %s3936_s4, [#allocation5]  }
0x137b   :  { %3743 = dma.done.wait [#allocation3], 512  }
0x137c   :  { %3744 = vsyncadd [#allocation3], 4294966784 }
0x137d   :  { %3745 = dma.done.wait [#allocation5], 128  }
0x137e   :  { %3746 = vsyncadd [#allocation5], 4294967168 }
0x137f   :  { %2813 = vsyncpa [#allocation3], 1 }
0x1380   :  { %2814 = vsyncpa [#allocation5], 1 }

</bundles_post_ra>
